<compile_context>
chip_gen: v5e
topology: v5e:2x2
jax: 0.10.0
libtpu: 0.0.40
codegen_flags: <defaults>
</compile_context>

<pallas_src>
import functools

import jax
import jax.numpy as jnp
from jax.experimental import pallas as pl
from jax.experimental.pallas import tpu as pltpu


# ----------------------------------------------------------------------------
# Pallas kernel: TripletConv forward for `batch_tile` batch elements.
#
# Ref layouts (rows are (b, i) flattened; lanes pack (j, c) / (k, j, c)):
#   x_ref      : (Bt*N, 2*N*D + D)   [ path_i | node_row(b) | node_i ]
#   w_big_ref  : (2*N*D + D, (N+4)*N*sub)  column blocks [U2 | V2 | PIK]
#   out_ref    : (Bt*N, N*D)
# ----------------------------------------------------------------------------
def triplet_conv_kernel(x_ref, w_big_ref, bias2_ref, wo_pad_ref, bo_row_ref,
                        out_ref, *, n_nodes, sub, batch_tile):
    N, Bt = n_nodes, batch_tile
    half = N * sub                       # lanes per k-slab ((j, c) packing)
    f32 = jnp.float32

    # Single fused MXU matmul produces every pre-loop intermediate:
    #   cols [0,        2*half) : U2  = a_i + a_j + p_ij   (duplicated halves)
    #   cols [2*half,   4*half) : V2  = a_k + p_kj         (duplicated halves)
    #   cols [4*half,   end   ) : PIK = p_ik, k-major, pair (k, k+1) per 128 lanes
    res = jnp.dot(x_ref[...], w_big_ref[...], preferred_element_type=f32)

    U2 = res[:, :2 * half] + bias2_ref[...]            # (Bt*N, 2*half)
    V2 = res[:, 2 * half:4 * half]                     # (Bt*N, 2*half)
    PIK = res[:, 4 * half:]                            # (Bt*N, N*half)

    lane = jax.lax.broadcasted_iota(jnp.int32, (1, 2 * half), 1)
    left = lane < half                                 # hoisted out of the loops

    # Hot loop: pure VALU add / relu / running-max on full 128-lane slabs
    # (two k values per iteration).  Unrolled at trace time (Bt*N/2 is small).
    # TODO(synk): switch to lax.fori_loop(unroll=...) before scaling N / Bt.
    t_rows = []
    for b in range(Bt):
        r0 = b * N
        u_b = U2[r0:r0 + N, :]                         # (N, 2*half)
        t_pair = None
        for p in range(N // 2):
            k = r0 + 2 * p
            # [ V row (b, 2p) | V row (b, 2p+1) ] via one vsel (no lane shifts).
            vp = jnp.where(left, V2[k:k + 1, :], V2[k + 1:k + 2, :])   # (1, 2*half)
            pik = PIK[r0:r0 + N, 2 * half * p:2 * half * (p + 1)]      # (N, 2*half)
            slab = jnp.maximum(u_b + vp + pik, 0.0)                    # ReLU
            t_pair = slab if t_pair is None else jnp.maximum(t_pair, slab)
        # Fold the even-k / odd-k halves -> max over all k (XLU roll, idle slot).
        t_rows.append(jnp.maximum(t_pair, pltpu.roll(t_pair, shift=half, axis=1)))
    t_ij = t_rows[0] if Bt == 1 else jnp.concatenate(t_rows, axis=0)   # (Bt*N, 2*half)

    # out_func: block-diagonal Linear(sub -> D) + ReLU, lane-dense (N*D) output.
    wo = wo_pad_ref[...]                               # bottom half is zeros
    out = jnp.dot(t_ij.astype(wo.dtype), wo,
                  preferred_element_type=f32) + bo_row_ref[...]
    out_ref[...] = jnp.maximum(out, 0.0).astype(out_ref.dtype)


# ----------------------------------------------------------------------------
# Trace-time weight folding / lane packing (tiny, runs outside the kernel).
# ----------------------------------------------------------------------------
def _fold_triplet_weights(p, N, dim, sub):
    """Fold node_proj / edge_proj into the triplet Linear and pack everything
    into one block-structured RHS for the single fused matmul.

    LHS row layout:  [ path_i (N*D) | node_row (N*D) | node_i (D) ]
    RHS col blocks:  [ U2 (2*N*sub) | V2 (2*N*sub) | PIK (N*N*sub) ]
    """
    f32 = jnp.float32
    hp = jax.lax.Precision.HIGHEST
    mm = functools.partial(jnp.matmul, precision=hp)

    F1, F2, F3 = [mm(p[f'wt{m}'], p['wn']).T.astype(f32) for m in (1, 2, 3)]
    G4, G5, G6 = [mm(p[f'wt{m}'], p['we']).T.astype(f32) for m in (4, 5, 6)]
    b_all = (p['bt']
             + mm(p['bn'], (p['wt1'] + p['wt2'] + p['wt3']).T)
             + mm(p['be'], (p['wt4'] + p['wt5'] + p['wt6']).T))        # (1, sub)

    eyeN = jnp.eye(N, dtype=f32)
    half = N * sub

    # TODO(synk): the kron(eye(N), .) block-diagonal weights are toy-size-only
    # (VMEM ~ N^2*D*sub bytes each, N-fold redundant MXU flops); for production
    # N switch the D->sub projections to a plain (B*N*N, D) x (D, sub)
    # contraction and keep lane-packing only for the cheap sub-wide pieces.
    w_path = jnp.concatenate([jnp.tile(jnp.kron(eyeN, G6), (1, 2)),    # U2 : p_ij
                              jnp.tile(jnp.kron(eyeN, G5), (1, 2)),    # V2 : p_kj
                              jnp.kron(eyeN, jnp.tile(G4, (1, N)))],   # PIK: p_ik
                             axis=1)
    w_nrow = jnp.concatenate([jnp.tile(jnp.kron(eyeN, F2), (1, 2)),    # U2 : a_j
                              jnp.zeros((N * dim, 2 * half), f32),     # V2 : --
                              jnp.zeros((N * dim, N * half), f32)],    # PIK: --
                             axis=1)
    w_node = jnp.concatenate([jnp.tile(F1, (1, 2 * N)),                # U2 : a_i
                              jnp.tile(F3, (1, 2 * N)),                # V2 : a_k
                              jnp.zeros((dim, N * half), f32)],        # PIK: --
                             axis=1)
    w_big = jnp.concatenate([w_path, w_nrow, w_node], axis=0)  # (2ND+D, (N+4)*half)

    bias2 = jnp.tile(b_all, (1, 2 * N)).astype(f32)                    # (1, 2*half)
    wo_pad = jnp.concatenate([jnp.kron(eyeN, p['wo'].T.astype(f32)),
                              jnp.zeros((half, N * dim), f32)], axis=0)  # (2*half, N*D)
    bo_row = jnp.tile(p['bo'], (1, N)).astype(f32)                      # (1, N*D)
    return w_big, bias2, wo_pad, bo_row


def triplet_conv_pallas(node_emb, path_emb, p, *, batch_tile=None,
                        compute_dtype=jnp.float32):
    """node_emb: [B*N, dim], path_emb: [B, N, N, dim] -> [B, N, N, dim]."""
    B, N, _, dim = path_emb.shape
    sub = p['wn'].shape[0]
    f32 = jnp.float32
    assert N % 2 == 0, "k-pair lane packing assumes an even number of nodes"
    # TODO(synk): odd N needs one unpaired tail iteration in the k loop.

    if batch_tile is None:
        # Fold batches per grid step (bigger MXU M, fewer per-step overheads)
        # but keep >= 2 grid steps so v7x's 2 TensorCores both get work.
        min_steps = 2 if B >= 2 else 1
        cands = [bt for bt in range(1, B + 1)
                 if B % bt == 0 and B // bt >= min_steps and bt * N <= 256]
        batch_tile = max(cands) if cands else 1
    assert B % batch_tile == 0
    Bt = batch_tile

    w_big, bias2, wo_pad, bo_row = _fold_triplet_weights(p, N, dim, sub)

    # Lane-dense, flat (B*N, .) layouts: batch folding is just a taller sublane
    # block; no in-kernel reshape ever touches the lane dimension.
    node_b = node_emb.reshape(B, N, dim)
    path_flat = path_emb.reshape(B * N, N * dim)
    nrow_rep = jnp.broadcast_to(node_b.reshape(B, 1, N * dim),
                                (B, N, N * dim)).reshape(B * N, N * dim)
    node_flat = node_emb.reshape(B * N, dim)
    x = jnp.concatenate([path_flat, nrow_rep, node_flat], axis=1)  # (B*N, 2*N*D + D)

    # v6e/v7x: pass compute_dtype=jnp.bfloat16 to halve DMA/VMEM of the matmul
    # operands (accumulation stays f32).  v5e: keep f32 (no bf16 VPU path).
    x = x.astype(compute_dtype)
    w_big = w_big.astype(compute_dtype)
    wo_pad = wo_pad.astype(compute_dtype)

    kernel = functools.partial(triplet_conv_kernel,
                               n_nodes=N, sub=sub, batch_tile=Bt)
    kx = x.shape[1]

    out = pl.pallas_call(
        kernel,
        out_shape=jax.ShapeDtypeStruct((B * N, N * dim), f32),
        grid=(B // Bt,),
        in_specs=[
            # If this per-step DMA ever becomes exposed at larger B/N, deepen
            # only this spec with pipeline_mode=pl.Buffered(3).
            pl.BlockSpec((Bt * N, kx), lambda g: (g, 0)),
            pl.BlockSpec(w_big.shape, lambda g: (0, 0)),   # weights stay resident
            pl.BlockSpec(bias2.shape, lambda g: (0, 0)),
            pl.BlockSpec(wo_pad.shape, lambda g: (0, 0)),
            pl.BlockSpec(bo_row.shape, lambda g: (0, 0)),
        ],
        out_specs=pl.BlockSpec((Bt * N, N * dim), lambda g: (g, 0)),
        compiler_params=pltpu.CompilerParams(
            dimension_semantics=("parallel",),             # batch steps independent
            vmem_limit_bytes=32 * 1024 * 1024),
    )(x, w_big, bias2, wo_pad, bo_row)

    return out.reshape(B, N, N, dim)


# ----------------------------------------------------------------------------
# Pure-JAX reference of TripletConv (mirrors the einops/torch code verbatim).
# ----------------------------------------------------------------------------
def triplet_conv_ref(node_emb, path_emb, p):
    B, N, _, dim = path_emb.shape
    sub = p['wn'].shape[0]
    hp = jax.lax.Precision.HIGHEST
    mm = functools.partial(jnp.matmul, precision=hp)
    ns = (mm(node_emb, p['wn'].T) + p['bn']).reshape(B, N, sub)
    es = mm(path_emb, p['we'].T) + p['be']                        # (B,N,N,sub)
    shp = (B, N, N, N, sub)
    n_i = jnp.broadcast_to(ns[:, :, None, None, :], shp)
    n_j = jnp.broadcast_to(ns[:, None, :, None, :], shp)
    n_k = jnp.broadcast_to(ns[:, None, None, :, :], shp)
    ef_ik = jnp.broadcast_to(es[:, :, None, :, :], shp)           # es[b,i,k]
    ef_kj = jnp.broadcast_to(jnp.transpose(es, (0, 2, 1, 3))[:, None, :, :, :], shp)  # es[b,k,j]
    ef_ij = jnp.broadcast_to(es[:, :, :, None, :], shp)           # es[b,i,j]
    cat = jnp.concatenate([n_i, n_j, n_k, ef_ik, ef_kj, ef_ij], axis=-1)
    wt = jnp.concatenate([p['wt1'], p['wt2'], p['wt3'],
                          p['wt4'], p['wt5'], p['wt6']], axis=1)
    t = jax.nn.relu(mm(cat, wt.T) + p['bt'])
    t_ij = jnp.max(t, axis=-2)                                    # max over k
    return jax.nn.relu(mm(t_ij, p['wo'].T) + p['bo'])


# ----------------------------------------------------------------------------
# graphConv (MPLayer): source not provided in the reference module.
# TODO(synk): MPLayer definition unavailable; approximated with a standard
# add-aggregation message-passing layer in plain JAX (not a faithful port).
# ----------------------------------------------------------------------------
def mp_layer_approx(node_emb, edge_index, u_path_emb, p, N):
    src, dst = edge_index[0], edge_index[1]
    b = src // N
    e_feat = u_path_emb[b, src % N, dst % N]                      # (E, dim)
    msg_in = jnp.concatenate([node_emb[src], node_emb[dst], e_feat], axis=-1)
    msg = jax.nn.relu(msg_in @ p['w_msg'].T + p['b_msg'])
    agg = jnp.zeros_like(node_emb).at[dst].add(msg)               # node_aggr='add'
    upd_in = jnp.concatenate([node_emb, agg], axis=-1)
    return jax.nn.relu(upd_in @ p['w_upd'].T + p['b_upd'])


def triplet_conv_module(node_emb, path_emb, edge_index, params, residual=True):
    N = path_emb.shape[1]
    u_path = triplet_conv_pallas(node_emb, path_emb, params['path'])
    u_node = mp_layer_approx(node_emb, edge_index, u_path, params['mp'], N)
    if residual:
        return u_node + node_emb, u_path + path_emb
    return u_node, u_path


# ----------------------------------------------------------------------------
# Deterministic parameter init (torch Linear default: U(-1/sqrt(fan_in), +)).
# ----------------------------------------------------------------------------
def make_params(key, dim, sub_dim):
    def linear(k, out_d, in_d):
        k1, k2 = jax.random.split(k)
        bound = 1.0 / jnp.sqrt(in_d)
        w = jax.random.uniform(k1, (out_d, in_d), jnp.float32, -bound, bound)
        b = jax.random.uniform(k2, (1, out_d), jnp.float32, -bound, bound)
        return w, b

    ks = jax.random.split(key, 6)
    wn, bn = linear(ks[0], sub_dim, dim)            # node_proj
    we, be = linear(ks[1], sub_dim, dim)            # edge_proj
    wt, bt = linear(ks[2], sub_dim, 6 * sub_dim)    # triplet_func linear
    wo, bo = linear(ks[3], dim, sub_dim)            # out_func linear
    w_msg, b_msg = linear(ks[4], dim, 3 * dim)      # MPLayer approx (message)
    w_upd, b_upd = linear(ks[5], dim, 2 * dim)      # MPLayer approx (update)

    path = dict(wn=wn, bn=bn, we=we, be=be, bt=bt, wo=wo, bo=bo)
    for m in range(6):
        path[f'wt{m + 1}'] = wt[:, m * sub_dim:(m + 1) * sub_dim]
    mp = dict(w_msg=w_msg, b_msg=b_msg, w_upd=w_upd, b_upd=b_upd)
    return dict(path=path, mp=mp)


if __name__ == "__main__":
    B, N, DIM, SUB = 4, 8, 32, 8        # B=4 -> batch_tile=2, grid=(2,)

    key = jax.random.PRNGKey(0)
    k_node, k_path, k_param = jax.random.split(key, 3)
    node_emb = jax.random.normal(k_node, (B * N, DIM), jnp.float32)
    path_emb = jax.random.normal(k_path, (B, N, N, DIM), jnp.float32)

    # simple bidirectional chain graph per batch element
    edges = []
    for b in range(B):
        for i in range(N - 1):
            edges.append((b * N + i, b * N + i + 1))
            edges.append((b * N + i + 1, b * N + i))
    edge_index = jnp.array(edges, dtype=jnp.int32).T   # (2, E)

    params = make_params(k_param, DIM, SUB)

    # Check the Pallas TripletConv kernel against the pure-JAX reference.
    # (Tolerance covers the f32 reassociation from trace-time weight folding
    #  and any XLA-vs-Mosaic matmul precision difference.)
    u_path_kernel = triplet_conv_pallas(node_emb, path_emb, params['path'])
    u_path_ref = triplet_conv_ref(node_emb, path_emb, params['path'])
    jax.block_until_ready(u_path_kernel)
    assert u_path_kernel.shape == (B, N, N, DIM)
    assert jnp.allclose(u_path_kernel, u_path_ref, atol=5e-3, rtol=5e-3), \
        "Pallas TripletConv kernel mismatch vs reference"

    # Full module forward.
    new_node, new_path = triplet_conv_module(node_emb, path_emb, edge_index,
                                             params, residual=True)
    jax.block_until_ready((new_node, new_path))
    assert new_node.shape == (B * N, DIM)
    assert new_path.shape == (B, N, N, DIM)
    print("KERNEL_OK")
</pallas_src>

<mosaic_0001>
module attributes {stable_mosaic.version = 11 : i64} {
  func.func @triplet_conv_kernel(%arg0: i32, %arg1: memref<16x544xf32, #tpu.memory_space<vmem>>, %arg2: memref<544x768xf32, #tpu.memory_space<vmem>>, %arg3: memref<1x128xf32, #tpu.memory_space<vmem>>, %arg4: memref<128x256xf32, #tpu.memory_space<vmem>>, %arg5: memref<1x256xf32, #tpu.memory_space<vmem>>, %arg6: memref<16x256xf32, #tpu.memory_space<vmem>>) attributes {dimension_semantics = [#tpu.dimension_semantics<parallel>], iteration_bounds = array<i64: 2>, scalar_prefetch = 0 : i64, scratch_operands = 0 : i64, tpu.core_type = #tpu.core_type<tc>, window_params = [{transform_indices = @transform_0, window_bounds = array<i64: 16, 544>}, {pipeline_mode = #tpu.pipeline_mode<synchronous>, transform_indices = @transform_1, window_bounds = array<i64: 544, 768>}, {pipeline_mode = #tpu.pipeline_mode<synchronous>, transform_indices = @transform_2, window_bounds = array<i64: 1, 128>}, {pipeline_mode = #tpu.pipeline_mode<synchronous>, transform_indices = @transform_3, window_bounds = array<i64: 128, 256>}, {pipeline_mode = #tpu.pipeline_mode<synchronous>, transform_indices = @transform_4, window_bounds = array<i64: 1, 256>}, {transform_indices = @transform_5, window_bounds = array<i64: 16, 256>}]} {
    %c0 = arith.constant 0 : index
    %c0_0 = arith.constant 0 : index
    %0 = vector.load %arg1[%c0, %c0_0] : memref<16x544xf32, #tpu.memory_space<vmem>>, vector<16x544xf32>
    %c0_1 = arith.constant 0 : index
    %c0_2 = arith.constant 0 : index
    %1 = vector.load %arg2[%c0_1, %c0_2] : memref<544x768xf32, #tpu.memory_space<vmem>>, vector<544x768xf32>
    %cst = arith.constant dense<0.000000e+00> : vector<16x768xf32>
    %2 = tpu.matmul %0, %1, %cst {dimension_numbers = #tpu.dot_dimension_numbers<[1], [0], [0], [1], [0, 0, 1, 1], [], []>} : vector<16x544xf32>, vector<544x768xf32>, vector<16x768xf32> -> vector<16x768xf32>
    %3 = vector.extract_strided_slice %2 {offsets = [0, 0], sizes = [16, 128], strides = [1, 1]} : vector<16x768xf32> to vector<16x128xf32>
    %c0_3 = arith.constant 0 : index
    %c0_4 = arith.constant 0 : index
    %4 = vector.load %arg3[%c0_3, %c0_4] : memref<1x128xf32, #tpu.memory_space<vmem>>, vector<1x128xf32>
    %5 = vector.broadcast %4 : vector<1x128xf32> to vector<16x128xf32>
    %6 = arith.addf %3, %5 : vector<16x128xf32>
    %7 = vector.extract_strided_slice %2 {offsets = [0, 128], sizes = [16, 128], strides = [1, 1]} : vector<16x768xf32> to vector<16x128xf32>
    %8 = vector.extract_strided_slice %2 {offsets = [0, 256], sizes = [16, 512], strides = [1, 1]} : vector<16x768xf32> to vector<16x512xf32>
    %9 = tpu.iota {dimensions = array<i32: 1>} : vector<1x128xi32>
    %c64_i32 = arith.constant 64 : i32
    %10 = vector.broadcast %c64_i32 : i32 to vector<1x128xi32>
    %11 = arith.cmpi slt, %9, %10 : vector<1x128xi32>
    %12 = vector.extract_strided_slice %6 {offsets = [0, 0], sizes = [8, 128], strides = [1, 1]} : vector<16x128xf32> to vector<8x128xf32>
    %13 = vector.extract_strided_slice %7 {offsets = [0, 0], sizes = [1, 128], strides = [1, 1]} : vector<16x128xf32> to vector<1x128xf32>
    %14 = vector.extract_strided_slice %7 {offsets = [1, 0], sizes = [1, 128], strides = [1, 1]} : vector<16x128xf32> to vector<1x128xf32>
    %15 = arith.select %11, %13, %14 : vector<1x128xi1>, vector<1x128xf32>
    %16 = vector.extract_strided_slice %8 {offsets = [0, 0], sizes = [8, 128], strides = [1, 1]} : vector<16x512xf32> to vector<8x128xf32>
    %17 = vector.broadcast %15 : vector<1x128xf32> to vector<8x128xf32>
    %18 = arith.addf %12, %17 : vector<8x128xf32>
    %19 = arith.addf %18, %16 : vector<8x128xf32>
    %cst_5 = arith.constant 0.000000e+00 : f32
    %20 = vector.broadcast %cst_5 : f32 to vector<8x128xf32>
    %21 = arith.maximumf %19, %20 : vector<8x128xf32>
    %22 = vector.extract_strided_slice %7 {offsets = [2, 0], sizes = [1, 128], strides = [1, 1]} : vector<16x128xf32> to vector<1x128xf32>
    %23 = vector.extract_strided_slice %7 {offsets = [3, 0], sizes = [1, 128], strides = [1, 1]} : vector<16x128xf32> to vector<1x128xf32>
    %24 = arith.select %11, %22, %23 : vector<1x128xi1>, vector<1x128xf32>
    %25 = vector.extract_strided_slice %8 {offsets = [0, 128], sizes = [8, 128], strides = [1, 1]} : vector<16x512xf32> to vector<8x128xf32>
    %26 = vector.broadcast %24 : vector<1x128xf32> to vector<8x128xf32>
    %27 = arith.addf %12, %26 : vector<8x128xf32>
    %28 = arith.addf %27, %25 : vector<8x128xf32>
    %cst_6 = arith.constant 0.000000e+00 : f32
    %29 = vector.broadcast %cst_6 : f32 to vector<8x128xf32>
    %30 = arith.maximumf %28, %29 : vector<8x128xf32>
    %31 = arith.maximumf %21, %30 : vector<8x128xf32>
    %32 = vector.extract_strided_slice %7 {offsets = [4, 0], sizes = [1, 128], strides = [1, 1]} : vector<16x128xf32> to vector<1x128xf32>
    %33 = vector.extract_strided_slice %7 {offsets = [5, 0], sizes = [1, 128], strides = [1, 1]} : vector<16x128xf32> to vector<1x128xf32>
    %34 = arith.select %11, %32, %33 : vector<1x128xi1>, vector<1x128xf32>
    %35 = vector.extract_strided_slice %8 {offsets = [0, 256], sizes = [8, 128], strides = [1, 1]} : vector<16x512xf32> to vector<8x128xf32>
    %36 = vector.broadcast %34 : vector<1x128xf32> to vector<8x128xf32>
    %37 = arith.addf %12, %36 : vector<8x128xf32>
    %38 = arith.addf %37, %35 : vector<8x128xf32>
    %cst_7 = arith.constant 0.000000e+00 : f32
    %39 = vector.broadcast %cst_7 : f32 to vector<8x128xf32>
    %40 = arith.maximumf %38, %39 : vector<8x128xf32>
    %41 = arith.maximumf %31, %40 : vector<8x128xf32>
    %42 = vector.extract_strided_slice %7 {offsets = [6, 0], sizes = [1, 128], strides = [1, 1]} : vector<16x128xf32> to vector<1x128xf32>
    %43 = vector.extract_strided_slice %7 {offsets = [7, 0], sizes = [1, 128], strides = [1, 1]} : vector<16x128xf32> to vector<1x128xf32>
    %44 = arith.select %11, %42, %43 : vector<1x128xi1>, vector<1x128xf32>
    %45 = vector.extract_strided_slice %8 {offsets = [0, 384], sizes = [8, 128], strides = [1, 1]} : vector<16x512xf32> to vector<8x128xf32>
    %46 = vector.broadcast %44 : vector<1x128xf32> to vector<8x128xf32>
    %47 = arith.addf %12, %46 : vector<8x128xf32>
    %48 = arith.addf %47, %45 : vector<8x128xf32>
    %cst_8 = arith.constant 0.000000e+00 : f32
    %49 = vector.broadcast %cst_8 : f32 to vector<8x128xf32>
    %50 = arith.maximumf %48, %49 : vector<8x128xf32>
    %51 = arith.maximumf %41, %50 : vector<8x128xf32>
    %c64_i32_9 = arith.constant 64 : i32
    %52 = tpu.dynamic_rotate %51 by %c64_i32_9 dim 1 : vector<8x128xf32>, i32 -> vector<8x128xf32>
    %53 = arith.maximumf %51, %52 : vector<8x128xf32>
    %54 = vector.extract_strided_slice %6 {offsets = [8, 0], sizes = [8, 128], strides = [1, 1]} : vector<16x128xf32> to vector<8x128xf32>
    %55 = vector.extract_strided_slice %7 {offsets = [8, 0], sizes = [1, 128], strides = [1, 1]} : vector<16x128xf32> to vector<1x128xf32>
    %56 = vector.extract_strided_slice %7 {offsets = [9, 0], sizes = [1, 128], strides = [1, 1]} : vector<16x128xf32> to vector<1x128xf32>
    %57 = arith.select %11, %55, %56 : vector<1x128xi1>, vector<1x128xf32>
    %58 = vector.extract_strided_slice %8 {offsets = [8, 0], sizes = [8, 128], strides = [1, 1]} : vector<16x512xf32> to vector<8x128xf32>
    %59 = vector.broadcast %57 : vector<1x128xf32> to vector<8x128xf32>
    %60 = arith.addf %54, %59 : vector<8x128xf32>
    %61 = arith.addf %60, %58 : vector<8x128xf32>
    %cst_10 = arith.constant 0.000000e+00 : f32
    %62 = vector.broadcast %cst_10 : f32 to vector<8x128xf32>
    %63 = arith.maximumf %61, %62 : vector<8x128xf32>
    %64 = vector.extract_strided_slice %7 {offsets = [10, 0], sizes = [1, 128], strides = [1, 1]} : vector<16x128xf32> to vector<1x128xf32>
    %65 = vector.extract_strided_slice %7 {offsets = [11, 0], sizes = [1, 128], strides = [1, 1]} : vector<16x128xf32> to vector<1x128xf32>
    %66 = arith.select %11, %64, %65 : vector<1x128xi1>, vector<1x128xf32>
    %67 = vector.extract_strided_slice %8 {offsets = [8, 128], sizes = [8, 128], strides = [1, 1]} : vector<16x512xf32> to vector<8x128xf32>
    %68 = vector.broadcast %66 : vector<1x128xf32> to vector<8x128xf32>
    %69 = arith.addf %54, %68 : vector<8x128xf32>
    %70 = arith.addf %69, %67 : vector<8x128xf32>
    %cst_11 = arith.constant 0.000000e+00 : f32
    %71 = vector.broadcast %cst_11 : f32 to vector<8x128xf32>
    %72 = arith.maximumf %70, %71 : vector<8x128xf32>
    %73 = arith.maximumf %63, %72 : vector<8x128xf32>
    %74 = vector.extract_strided_slice %7 {offsets = [12, 0], sizes = [1, 128], strides = [1, 1]} : vector<16x128xf32> to vector<1x128xf32>
    %75 = vector.extract_strided_slice %7 {offsets = [13, 0], sizes = [1, 128], strides = [1, 1]} : vector<16x128xf32> to vector<1x128xf32>
    %76 = arith.select %11, %74, %75 : vector<1x128xi1>, vector<1x128xf32>
    %77 = vector.extract_strided_slice %8 {offsets = [8, 256], sizes = [8, 128], strides = [1, 1]} : vector<16x512xf32> to vector<8x128xf32>
    %78 = vector.broadcast %76 : vector<1x128xf32> to vector<8x128xf32>
    %79 = arith.addf %54, %78 : vector<8x128xf32>
    %80 = arith.addf %79, %77 : vector<8x128xf32>
    %cst_12 = arith.constant 0.000000e+00 : f32
    %81 = vector.broadcast %cst_12 : f32 to vector<8x128xf32>
    %82 = arith.maximumf %80, %81 : vector<8x128xf32>
    %83 = arith.maximumf %73, %82 : vector<8x128xf32>
    %84 = vector.extract_strided_slice %7 {offsets = [14, 0], sizes = [1, 128], strides = [1, 1]} : vector<16x128xf32> to vector<1x128xf32>
    %85 = vector.extract_strided_slice %7 {offsets = [15, 0], sizes = [1, 128], strides = [1, 1]} : vector<16x128xf32> to vector<1x128xf32>
    %86 = arith.select %11, %84, %85 : vector<1x128xi1>, vector<1x128xf32>
    %87 = vector.extract_strided_slice %8 {offsets = [8, 384], sizes = [8, 128], strides = [1, 1]} : vector<16x512xf32> to vector<8x128xf32>
    %88 = vector.broadcast %86 : vector<1x128xf32> to vector<8x128xf32>
    %89 = arith.addf %54, %88 : vector<8x128xf32>
    %90 = arith.addf %89, %87 : vector<8x128xf32>
    %cst_13 = arith.constant 0.000000e+00 : f32
    %91 = vector.broadcast %cst_13 : f32 to vector<8x128xf32>
    %92 = arith.maximumf %90, %91 : vector<8x128xf32>
    %93 = arith.maximumf %83, %92 : vector<8x128xf32>
    %c64_i32_14 = arith.constant 64 : i32
    %94 = tpu.dynamic_rotate %93 by %c64_i32_14 dim 1 : vector<8x128xf32>, i32 -> vector<8x128xf32>
    %95 = arith.maximumf %93, %94 : vector<8x128xf32>
    %96 = tpu.concatenate %53, %95 in 0 : vector<8x128xf32>, vector<8x128xf32> -> vector<16x128xf32>
    %c0_15 = arith.constant 0 : index
    %c0_16 = arith.constant 0 : index
    %97 = vector.load %arg4[%c0_15, %c0_16] : memref<128x256xf32, #tpu.memory_space<vmem>>, vector<128x256xf32>
    %cst_17 = arith.constant dense<0.000000e+00> : vector<16x256xf32>
    %98 = tpu.matmul %96, %97, %cst_17 {dimension_numbers = #tpu.dot_dimension_numbers<[1], [0], [0], [1], [0, 0, 1, 1], [], []>} : vector<16x128xf32>, vector<128x256xf32>, vector<16x256xf32> -> vector<16x256xf32>
    %c0_18 = arith.constant 0 : index
    %c0_19 = arith.constant 0 : index
    %99 = vector.load %arg5[%c0_18, %c0_19] : memref<1x256xf32, #tpu.memory_space<vmem>>, vector<1x256xf32>
    %100 = vector.broadcast %99 : vector<1x256xf32> to vector<16x256xf32>
    %101 = arith.addf %98, %100 : vector<16x256xf32>
    %cst_20 = arith.constant 0.000000e+00 : f32
    %102 = vector.broadcast %cst_20 : f32 to vector<16x256xf32>
    %103 = arith.maximumf %101, %102 : vector<16x256xf32>
    %c0_21 = arith.constant 0 : index
    %c0_22 = arith.constant 0 : index
    %104 = vector.load %arg6[%c0_21, %c0_22] : memref<16x256xf32, #tpu.memory_space<vmem>>, vector<16x256xf32>
    tpu.vector_store %arg6[%c0_21, %c0_22], %103 {strides = array<i32>} : memref<16x256xf32, #tpu.memory_space<vmem>>, vector<16x256xf32>,
    return
  }
  func.func @transform_0(%arg0: i32) -> (i32, i32) {
    %c0_i32 = arith.constant 0 : i32
    %c0_i32_0 = arith.constant 0 : i32
    return %arg0, %c0_i32 : i32, i32
  }
  func.func @transform_1(%arg0: i32) -> (i32, i32) {
    %c0_i32 = arith.constant 0 : i32
    %c0_i32_0 = arith.constant 0 : i32
    %c0_i32_1 = arith.constant 0 : i32
    return %c0_i32, %c0_i32_0 : i32, i32
  }
  func.func @transform_2(%arg0: i32) -> (i32, i32) {
    %c0_i32 = arith.constant 0 : i32
    %c0_i32_0 = arith.constant 0 : i32
    %c0_i32_1 = arith.constant 0 : i32
    return %c0_i32, %c0_i32_0 : i32, i32
  }
  func.func @transform_3(%arg0: i32) -> (i32, i32) {
    %c0_i32 = arith.constant 0 : i32
    %c0_i32_0 = arith.constant 0 : i32
    %c0_i32_1 = arith.constant 0 : i32
    return %c0_i32, %c0_i32_0 : i32, i32
  }
  func.func @transform_4(%arg0: i32) -> (i32, i32) {
    %c0_i32 = arith.constant 0 : i32
    %c0_i32_0 = arith.constant 0 : i32
    %c0_i32_1 = arith.constant 0 : i32
    return %c0_i32, %c0_i32_0 : i32, i32
  }
  func.func @transform_5(%arg0: i32) -> (i32, i32) {
    %c0_i32 = arith.constant 0 : i32
    %c0_i32_0 = arith.constant 0 : i32
    return %arg0, %c0_i32 : i32, i32
  }
}

</mosaic_0001>

<bundles_post_ra>
// kernel: tpu_custom_call.1
= control target key start
LH: loop header
LB: loop body
LE: loop exit
PB: predicated region body
PF: predicated region fallthrough
CT: control target
= control target key end

     0   :  { %s2463_s0 = inlined_call_operand.hbm [shape: f32[32,544], index: 0, kind: input, shape index: {}]   ;;  %s2464_s1 = inlined_call_operand.hbm [shape: f32[544,768], index: 1, kind: input, shape index: {}]   ;;  %s2465_s2 = inlined_call_operand.hbm [shape: f32[1,128], index: 2, kind: input, shape index: {}]   ;;  %s2466_s3 = inlined_call_operand.hbm [shape: f32[128,256], index: 3, kind: input, shape index: {}]   ;;  %s2467_s4 = inlined_call_operand.hbm [shape: f32[1,256], index: 4, kind: input, shape index: {}]   ;;  %s2468_s5 = inlined_call_operand.hbm [shape: f32[32,256], index: 5, kind: output, shape index: {}]  }
   0x1   :  { %2469 = sst [smem:[#allocation16_spill]] %s2464_s1 }
   0x2   :  { %10 = vsyncpa [#allocation3], 0 }
   0x3   :  { %12 = vsyncpa [#allocation3 + $0x1], 0 }
   0x4   :  { %13 = vsyncpa [#allocation6], 0 }
   0x5   :  { %14 = vsyncpa [#allocation9], 0 }
   0x6   :  { %15 = vsyncpa [#allocation4], 0 }
   0x7   :  { %17 = vsyncpa [#allocation4 + $0x1], 0  ;;  %s2121_s18 = smov 0   ;;  %s2123_s19 = smov 0  }
   0x8   :  { %s2125_s20 = smov 0   ;;  %s2127_s21 = smov 0  }
   0x9 LB: > { %s2142_s22 = sadd.s32 4294967295, %s2076_s21   ;;  %s1706_s23 = sadd.s32 4294967294, %s2076_s21   ;;  %s2076_s21 = sphi %s2127_s21, %s2481_s21   ;;  %s2072_s20 = sphi %s2125_s20, %s2480_s20   ;;  %s2068_s19 = sphi %s2123_s19, %s2479_s19   ;;  %s2064_s18 = sphi %s2121_s18, %s2478_s18  }
   0xa   : > { %p43_p0 = scmp.ne.s32.totalorder %s2068_s19, %s2064_s18  ;;  %p44_p1 = scmp.eq.s32.totalorder %s2142_s22, 0 }
   0xb   : > { %p151_p2 = scmp.eq.s32.totalorder %s2142_s22, 1  ;;  %p157_p3 = scmp.eq.s32.totalorder %s1706_s23, 1 }
   0xc   : > { %p2151_p4 = por %p44_p1, %p43_p0  ;;  %p1707_p5 = scmp.ge.s32.totalorder %s2076_s21, 1 }
   0xd   : > { %p2156_p6 = por %p157_p3, %p43_p0  ;;  %p164_p7 = scmp.lt.s32.totalorder %s2076_s21, 3 }
   0xe   : > { %s2472_s1 = sld [smem:[#allocation16_spill]]  ;;  %s2078_s30 = smov [#allocation5]  }
   0xf   : > { %p2164_p8 = pnand %p1707_p5, %p164_p7  ;;  %s177_s6 = sshll.u32 %s2078_s30, 4  ;;  %s178_s6 = int_to_ptr.vmem [resolvable:$true] %s177_s6 }
  0x10   : > { %s201_s10 = sshll.u32 %s2466_s3, 4  ;;  %s2079_s11 = smov 768   ;;  %s202_s10 = int_to_ptr.hbm [resolvable:$true] %s201_s10 }
  0x11   : > { %p1765_p9 = pneg %p2164_p8  ;;  %s2080_s12 = smov 48  }
  0x12   : > { %s2081_s13 = smov [#allocation8]   ;;  %s2082_s15 = smov 256  }
  0x13   : > { %p2172_p10 = pnand %p1765_p9, %p44_p1  ;;  %s203_s14 = sshll.u32 %s2081_s13, 4  ;;  %s204_s14 = int_to_ptr.vmem [resolvable:$true] %s203_s14 }
  0x14   : > { %s175_s28 = sshll.u32 %s2472_s1, 4  ;;  %s2083_s16 = smov 16   ;;  %s176_s28 = int_to_ptr.hbm [resolvable:$true] %s175_s28 }
  0x15   : > { %1768 = dma.hbm_to_vmem [thread:$0]  (!%p2172_p10), %s176_s28, 52224, %s178_s6, [#allocation6], %s2079_s11, %s2079_s11, %s2080_s12  }
  0x16   : > { %1774 = dma.hbm_to_vmem [thread:$0]  (!%p2172_p10), %s202_s10, 4096, %s204_s14, [#allocation9], %s2082_s15, %s2082_s15, %s2083_s16  }
  0x17   : > { %s190_s26 = sshll.u32 %s2465_s2, 4  ;;  %s2084_s27 = smov [#allocation7]   ;;  %s191_s26 = int_to_ptr.hbm [resolvable:$true] %s190_s26 }
  0x18   : > { %s192_s28 = sshll.u32 %s2084_s27, 4  ;;  %s216_s8 = sshll.u32 %s2467_s4, 4  ;;  %s193_s28 = int_to_ptr.vmem [resolvable:$true] %s192_s28  ;;  %s217_s8 = int_to_ptr.hbm [resolvable:$true] %s216_s8 }
  0x19   : > { %1771 = dma.hbm_to_vmem [thread:$0]  (!%p2172_p10), %s191_s26, 16, %s193_s28, [#allocation6]  }
  0x1a   : > { %s2085_s9 = smov [#allocation10]   ;;  %s2195_s11 = sadd.s32 1, %s2076_s21  }
  0x1b   : > { %s218_s10 = sshll.u32 %s2085_s9, 4  ;;  %s30_s12 = sadd.s32 1, %s2072_s20  ;;  %s219_s10 = int_to_ptr.vmem [resolvable:$true] %s218_s10 }
  0x1c   : > { %1777 = dma.hbm_to_vmem [thread:$0]  (!%p2172_p10), %s217_s8, 32, %s219_s10, [#allocation9]  }
  0x1d   : > { %s27_s13 = ssub.s32 %s2076_s21, %s2195_s11  ;;  %p37_p12 = scmp.ne.s32.totalorder %s2072_s20, %s2068_s19 }
  0x1e   : > { %p28_p13 = scmp.eq.s32.totalorder %s27_s13, 0  ;;  %p38_p0 = scmp.eq.s32.totalorder %s2076_s21, 0 }
  0x1f   : > { %p2205_p3 = por %p151_p2, %p37_p12  ;;  %p1790_p5 = scmp.lt.s32.totalorder %s2076_s21, 2 }
  0x20   : > { %s2211_s15 = scalar_select %p28_p13, %s2072_s20, %s30_s12  }
  0x21   : > { %p39_p7 = por %p38_p0, %p37_p12  ;;  %s229_s16 = sand.u32 1, %s2072_s20  }
  0x22   : > { %s1742_s7 = smul.u32 80, %s229_s16  ;;  %s230_s9 = scalar_lea.sflag [#allocation3], %s229_s16 }
  0x23   : > { %s1743_s17 = smul.u32 80, %s2076_s21  ;;  %p2215_p9 = pnand %p1790_p5, %p39_p7 }
  0x24   : > { %s233_s30 = scalar_lea.vmem [#allocation2], %s1742_s7  ;;  %s1979_s26 = scalar_lea.hbm %s2463_s0, 160 }
  0x25   : > { %s239_s28 = scalar_lea.hbm %s2463_s0, %s1743_s17  ;;  %s242_s6 = sshll.u32 %s233_s30, 4  ;;  %s243_s6 = int_to_ptr.vmem [resolvable:$true] %s242_s6 }
  0x26   : > { %s240_s8 = sshll.u32 %s239_s28, 4  ;;  %p1976_p10 = pneg %p2215_p9  ;;  %s241_s8 = int_to_ptr.hbm [resolvable:$true] %s240_s8 }
  0x27   : > { %s1972_s10 = sshra.s32 %s241_s8, 4  ;;  %s1973_s10 = int_to_ptr.hbm [resolvable:$true] %s1972_s10 }
  0x28   : > { %s1974_s12 = scalar_lea.hbm %s1973_s10, 80  ;;  %p1980_p0 = scmp.lt.s32.totalorder %s1973_s10, %s2463_s0 }
  0x29   : > { %p1975_p2 = scmp.ne.s32.totalorder %s1973_s10, %s1974_s12  ;;  %p1981_p5 = scmp.lt.s32.totalorder %s1979_s26, %s1974_s12 }
  0x2b   : > { %p1977_p12 = pnand %p1976_p10, %p1975_p2  ;;  %p1982_p7 = por %p1981_p5, %p1980_p0 }
  0x2d   : > { %p1978_p13 = pneg %p1977_p12 }
  0x2f   : > { %p1983_p11 = pnand %p1982_p7, %p1978_p13 }
  0x31   : > { %1986 = shalt.err (!%p1983_p11)
}
  0x32   : > { %s2086_s16 = smov 640   ;;  %s2087_s7 = smov 40  }
  0x33   : > { %1781 = dma.hbm_to_vmem [thread:$0]  (!%p2215_p9), %s241_s8, 1280, %s243_s6, %s230_s9, %s2086_s16, %s2086_s16, %s2087_s7  }
  0x34   : > { %254 = sbr.rel (%p2164_p8) target bundleno = 704 (0x2c0), region = 40  ;;  %s2235_s1 = sand.u32 (!%p2164_p8), 1, %s2068_s19  }
  0x35   : > { %s1744_s28 = smul.u32 (!%p2164_p8), 80, %s2235_s1  ;;  %s257_s30 = scalar_lea.sflag (!%p2164_p8), [#allocation3], %s2235_s1 }
  0x37   : > { %s2239_s10 = scalar_lea.vmem (!%p2164_p8), [#allocation2], %s1744_s28 }
  0x39   : > { %2047 = dma.done.wait (%p2151_p4), %s257_s30, 1280  }
  0x3a   : > { %2049 = vsyncadd (%p2151_p4), %s257_s30, 4294966016 }
  0x3b   : > { %2051 = dma.done.wait (%p44_p1), [#allocation6], 52240  }
  0x3c   : > { %2053 = vsyncadd (%p44_p1), [#allocation6], 4294915056 }
  0x3d   : > { %2055 = dma.done.wait (%p44_p1), [#allocation9], 4128  }
  0x3e   : > { %2057 = vsyncadd (%p44_p1), [#allocation9], 4294963168  ;;  %v410_v0 = vld [vmem:[#allocation5 + $0x2d0] sm:$0xff]  ;;  %v404_v4 = vld [vmem:[#allocation5 + $0x2a0] sm:$0xff]  ;;  %vm728_vm0 = vcmask 261120   ;;  %s2088_s24 = smov 64  }
  0x3f   : > { %v506_v1 = vld [vmem:[#allocation5 + $0x5d0] sm:$0xff]  ;;  %735 = vmatpush.msra.mxu0 %v410_v0  ;;  %v500_v5 = vld [vmem:[#allocation5 + $0x5a0] sm:$0xff]  ;;  %s1721_s29 = sshll.u32 %s2235_s1, 5  ;;  %s1741_s23 = sshll.u32 %s2142_s22, 5 }
  0x40   : > { %v602_v2 = vld [vmem:[#allocation5 + $0x8d0] sm:$0xff]  ;;  %758 = vmatpush.msra.mxu1 %v506_v1  ;;  %v596_v6 = vld [vmem:[#allocation5 + $0x8a0] sm:$0xff]  ;;  %v411_v1 = vld [vmem:[#allocation5 + $0x2d8] sm:$0xff]  ;;  %s307_s6 = scalar_lea.vmem [#allocation11], %s1721_s29  ;;  %s1591_s12 = scalar_lea.hbm %s2468_s5, %s1741_s23 }
  0x41   : > { %v698_v3 = vld [vmem:[#allocation5 + $0xbd0] sm:$0xff]  ;;  %781 = vmatpush.msra.mxu2 %v602_v2  ;;  %v692_v7 = vld [vmem:[#allocation5 + $0xba0] sm:$0xff]  ;;  %736 = vmatpush.msra.mxu0 %v404_v4  ;;  %v507_v2 = vld [vmem:[#allocation5 + $0x5d8] sm:$0xff]  ;;  %s1592_s13 = sshll.u32 %s307_s6, 4  ;;  %s1594_s26 = sshll.u32 %s1591_s12, 4  ;;  %s1593_s13 = int_to_ptr.vmem [resolvable:$true] %s1592_s13  ;;  %s1595_s26 = int_to_ptr.hbm [resolvable:$true] %s1594_s26 }
  0x42   : > { %804 = vmatpush.msra.mxu3 %v698_v3  ;;  %v398_v8 = vld [vmem:[#allocation5 + $0x270] sm:$0xff]  ;;  %759 = vmatpush.msra.mxu1 %v500_v5  ;;  %v392_v12 = vld [vmem:[#allocation5 + $0x240] sm:$0xff]  ;;  %v603_v3 = vld [vmem:[#allocation5 + $0x8d8] sm:$0xff]  ;;  %s1579_s22 = scalar_lea.sflag [#allocation4], %s2235_s1  ;;  %s2016_s27 = sshra.s32 %s1595_s26, 4  ;;  %s2017_s27 = int_to_ptr.hbm [resolvable:$true] %s2016_s27 }
  0x43   : > { %v494_v9 = vld [vmem:[#allocation5 + $0x570] sm:$0xff]  ;;  %782 = vmatpush.msra.mxu2 %v596_v6  ;;  %v488_v13 = vld [vmem:[#allocation5 + $0x540] sm:$0xff]  ;;  %737 = vmatpush.msra.mxu0 %v398_v8  ;;  %v405_v5 = vld [vmem:[#allocation5 + $0x2a8] sm:$0xff]  ;;  %s2018_s17 = scalar_lea.hbm %s2017_s27, 32  ;;  %s2022_s28 = scalar_lea.hbm %s2468_s5, 64 }
  0x44   : > { %v590_v10 = vld [vmem:[#allocation5 + $0x870] sm:$0xff]  ;;  %805 = vmatpush.msra.mxu3 %v692_v7  ;;  %760 = vmatpush.msra.mxu1 %v494_v9  ;;  %v584_v14 = vld [vmem:[#allocation5 + $0x840] sm:$0xff]  ;;  %v501_v6 = vld [vmem:[#allocation5 + $0x5a8] sm:$0xff]  ;;  %p2019_p1 = scmp.ne.s32.totalorder %s2017_s27, %s2018_s17  ;;  %p2023_p11 = scmp.lt.s32.totalorder %s2017_s27, %s2468_s5 }
  0x45   : > { %v686_v11 = vld [vmem:[#allocation5 + $0xb70] sm:$0xff]  ;;  %v680_v15 = vld [vmem:[#allocation5 + $0xb40] sm:$0xff]  ;;  %783 = vmatpush.msra.mxu2 %v590_v10  ;;  %738 = vmatpush.msra.mxu0 %v392_v12  ;;  %v597_v7 = vld [vmem:[#allocation5 + $0x8a8] sm:$0xff]  ;;  %p2024_p9 = scmp.lt.s32.totalorder %s2022_s28, %s2018_s17 }
  0x46   : > { %806 = vmatpush.msra.mxu3 %v686_v11  ;;  %v386_v16 = vld [vmem:[#allocation5 + $0x210] sm:$0xff]  ;;  %761 = vmatpush.msra.mxu1 %v488_v13  ;;  %v380_v20 = vld [vmem:[#allocation5 + $0x1e0] sm:$0xff]  ;;  %v399_v9 = vld [vmem:[#allocation5 + $0x278] sm:$0xff]  ;;  %p2020_p4 = pnand %p2019_p1, %p2205_p3 }
  0x47   : > { %v482_v17 = vld [vmem:[#allocation5 + $0x510] sm:$0xff]  ;;  %784 = vmatpush.msra.mxu2 %v584_v14  ;;  %v476_v21 = vld [vmem:[#allocation5 + $0x4e0] sm:$0xff]  ;;  %739 = vmatpush.msra.mxu0 %v386_v16  ;;  %v495_v11 = vld [vmem:[#allocation5 + $0x578] sm:$0xff]  ;;  %p2025_p2 = por %p2024_p9, %p2023_p11 }
  0x48   : > { %v578_v18 = vld [vmem:[#allocation5 + $0x810] sm:$0xff]  ;;  %807 = vmatpush.msra.mxu3 %v680_v15  ;;  %762 = vmatpush.msra.mxu1 %v482_v17  ;;  %v572_v22 = vld [vmem:[#allocation5 + $0x7e0] sm:$0xff]  ;;  %v591_v12 = vld [vmem:[#allocation5 + $0x878] sm:$0xff]  ;;  %p2021_p8 = pneg %p2020_p4 }
  0x49   : > { %v674_v19 = vld [vmem:[#allocation5 + $0xb10] sm:$0xff]  ;;  %v668_v23 = vld [vmem:[#allocation5 + $0xae0] sm:$0xff]  ;;  %785 = vmatpush.msra.mxu2 %v578_v18  ;;  %740 = vmatpush.msra.mxu0 %v380_v20  ;;  %v393_v13 = vld [vmem:[#allocation5 + $0x248] sm:$0xff] }
  0x4a   : > { %808 = vmatpush.msra.mxu3 %v674_v19  ;;  %v374_v24 = vld [vmem:[#allocation5 + $0x1b0] sm:$0xff]  ;;  %763 = vmatpush.msra.mxu1 %v476_v21  ;;  %v368_v28 = vld [vmem:[#allocation5 + $0x180] sm:$0xff]  ;;  %v489_v15 = vld [vmem:[#allocation5 + $0x548] sm:$0xff]  ;;  %p2026_p10 = pnand %p2025_p2, %p2021_p8 }
  0x4b   : > { %v470_v25 = vld [vmem:[#allocation5 + $0x4b0] sm:$0xff]  ;;  %786 = vmatpush.msra.mxu2 %v572_v22  ;;  %v464_v29 = vld [vmem:[#allocation5 + $0x480] sm:$0xff]  ;;  %741 = vmatpush.msra.mxu0 %v374_v24  ;;  %v585_v16 = vld [vmem:[#allocation5 + $0x848] sm:$0xff] }
  0x4c   : > { %v566_v26 = vld [vmem:[#allocation5 + $0x7b0] sm:$0xff]  ;;  %809 = vmatpush.msra.mxu3 %v668_v23  ;;  %764 = vmatpush.msra.mxu1 %v470_v25  ;;  %v560_v30 = vld [vmem:[#allocation5 + $0x780] sm:$0xff]  ;;  %v699_v17 = vld [vmem:[#allocation5 + $0xbd8] sm:$0xff] }
  0x4d   : > { %v662_v27 = vld [vmem:[#allocation5 + $0xab0] sm:$0xff]  ;;  %v656_v31 = vld [vmem:[#allocation5 + $0xa80] sm:$0xff]  ;;  %787 = vmatpush.msra.mxu2 %v566_v26  ;;  %742 = vmatpush.msra.mxu0 %v368_v28  ;;  %v387_v18 = vld [vmem:[#allocation5 + $0x218] sm:$0xff] }
  0x4e   : > { %810 = vmatpush.msra.mxu3 %v662_v27  ;;  %v362_v32 = vld [vmem:[#allocation5 + $0x150] sm:$0xff]  ;;  %765 = vmatpush.msra.mxu1 %v464_v29  ;;  %v356_v36 = vld [vmem:[#allocation5 + $0x120] sm:$0xff]  ;;  %v483_v19 = vld [vmem:[#allocation5 + $0x518] sm:$0xff] }
  0x4f   : > { %v458_v33 = vld [vmem:[#allocation5 + $0x450] sm:$0xff]  ;;  %788 = vmatpush.msra.mxu2 %v560_v30  ;;  %v452_v37 = vld [vmem:[#allocation5 + $0x420] sm:$0xff]  ;;  %743 = vmatpush.msra.mxu0 %v362_v32  ;;  %v579_v20 = vld [vmem:[#allocation5 + $0x818] sm:$0xff] }
  0x50   : > { %v554_v34 = vld [vmem:[#allocation5 + $0x750] sm:$0xff]  ;;  %811 = vmatpush.msra.mxu3 %v656_v31  ;;  %766 = vmatpush.msra.mxu1 %v458_v33  ;;  %v548_v38 = vld [vmem:[#allocation5 + $0x720] sm:$0xff]  ;;  %v693_v21 = vld [vmem:[#allocation5 + $0xba8] sm:$0xff] }
  0x51   : > { %v650_v35 = vld [vmem:[#allocation5 + $0xa50] sm:$0xff]  ;;  %v644_v39 = vld [vmem:[#allocation5 + $0xa20] sm:$0xff]  ;;  %789 = vmatpush.msra.mxu2 %v554_v34  ;;  %744 = vmatpush.msra.mxu0 %v356_v36  ;;  %v381_v23 = vld [vmem:[#allocation5 + $0x1e8] sm:$0xff] }
  0x52   : > { %812 = vmatpush.msra.mxu3 %v650_v35  ;;  %v350_v40 = vld [vmem:[#allocation5 + $0xf0] sm:$0xff]  ;;  %767 = vmatpush.msra.mxu1 %v452_v37  ;;  %v344_v44 = vld [vmem:[#allocation5 + $0xc0] sm:$0xff]  ;;  %v477_v24 = vld [vmem:[#allocation5 + $0x4e8] sm:$0xff] }
  0x53   : > { %v446_v41 = vld [vmem:[#allocation5 + $0x3f0] sm:$0xff]  ;;  %790 = vmatpush.msra.mxu2 %v548_v38  ;;  %v440_v45 = vld [vmem:[#allocation5 + $0x3c0] sm:$0xff]  ;;  %745 = vmatpush.msra.mxu0 %v350_v40  ;;  %v573_v25 = vld [vmem:[#allocation5 + $0x7e8] sm:$0xff] }
  0x54   : > { %v542_v42 = vld [vmem:[#allocation5 + $0x6f0] sm:$0xff]  ;;  %813 = vmatpush.msra.mxu3 %v644_v39  ;;  %768 = vmatpush.msra.mxu1 %v446_v41  ;;  %v536_v46 = vld [vmem:[#allocation5 + $0x6c0] sm:$0xff]  ;;  %v687_v26 = vld [vmem:[#allocation5 + $0xb78] sm:$0xff] }
  0x55   : > { %v638_v43 = vld [vmem:[#allocation5 + $0x9f0] sm:$0xff]  ;;  %v632_v47 = vld [vmem:[#allocation5 + $0x9c0] sm:$0xff]  ;;  %791 = vmatpush.msra.mxu2 %v542_v42  ;;  %746 = vmatpush.msra.mxu0 %v344_v44  ;;  %v2261_v27 = vld [vmem:[%s2239_s10 + $0x18] sm:$0xff] }
  0x56   : > { %814 = vmatpush.msra.mxu3 %v638_v43  ;;  %v338_v48 = vld [vmem:[#allocation5 + $0x90] sm:$0xff]  ;;  %769 = vmatpush.msra.mxu1 %v440_v45  ;;  %v332_v52 = vld [vmem:[#allocation5 + $0x60] sm:$0xff]  ;;  %v2265_v28 = vld [vmem:[%s2239_s10 + $0x28] sm:$0xff] }
  0x57   : > { %v434_v49 = vld [vmem:[#allocation5 + $0x390] sm:$0xff]  ;;  %792 = vmatpush.msra.mxu2 %v536_v46  ;;  %v428_v53 = vld [vmem:[#allocation5 + $0x360] sm:$0xff]  ;;  %747 = vmatpush.msra.mxu0 %v338_v48  ;;  %v375_v29 = vld [vmem:[#allocation5 + $0x1b8] sm:$0xff] }
  0x58   : > { %v530_v50 = vld [vmem:[#allocation5 + $0x690] sm:$0xff]  ;;  %815 = vmatpush.msra.mxu3 %v632_v47  ;;  %770 = vmatpush.msra.mxu1 %v434_v49  ;;  %v524_v54 = vld [vmem:[#allocation5 + $0x660] sm:$0xff]  ;;  %v471_v30 = vld [vmem:[#allocation5 + $0x4b8] sm:$0xff] }
  0x59   : > { %v626_v51 = vld [vmem:[#allocation5 + $0x990] sm:$0xff]  ;;  %v620_v55 = vld [vmem:[#allocation5 + $0x960] sm:$0xff]  ;;  %793 = vmatpush.msra.mxu2 %v530_v50  ;;  %748 = vmatpush.msra.mxu0 %v332_v52  ;;  %v567_v31 = vld [vmem:[#allocation5 + $0x7b8] sm:$0xff] }
  0x5a   : > { %816 = vmatpush.msra.mxu3 %v626_v51  ;;  %v326_v56 = vld [vmem:[#allocation5 + $0x30] sm:$0xff]  ;;  %771 = vmatpush.msra.mxu1 %v428_v53  ;;  %v320_v60 = vld [vmem:[#allocation5] sm:$0xff]  ;;  %v681_v32 = vld [vmem:[#allocation5 + $0xb48] sm:$0xff] }
  0x5b   : > { %v422_v57 = vld [vmem:[#allocation5 + $0x330] sm:$0xff]  ;;  %794 = vmatpush.msra.mxu2 %v524_v54  ;;  %v416_v61 = vld [vmem:[#allocation5 + $0x300] sm:$0xff]  ;;  %749 = vmatpush.msra.mxu0 %v326_v56  ;;  %v2269_v33 = vld [vmem:[%s2239_s10 + $0x8] sm:$0xff] }
  0x5c   : > { %v518_v58 = vld [vmem:[#allocation5 + $0x630] sm:$0xff]  ;;  %817 = vmatpush.msra.mxu3 %v620_v55  ;;  %772 = vmatpush.msra.mxu1 %v422_v57  ;;  %v512_v62 = vld [vmem:[#allocation5 + $0x600] sm:$0xff]  ;;  %v369_v34 = vld [vmem:[#allocation5 + $0x188] sm:$0xff] }
  0x5d   : > { %v614_v59 = vld [vmem:[#allocation5 + $0x930] sm:$0xff]  ;;  %v608_v63 = vld [vmem:[#allocation5 + $0x900] sm:$0xff]  ;;  %795 = vmatpush.msra.mxu2 %v518_v58  ;;  %750 = vmatpush.msra.mxu0 %v320_v60  ;;  %v465_v35 = vld [vmem:[#allocation5 + $0x488] sm:$0xff] }
  0x5e   : > { %818 = vmatpush.msra.mxu3 %v614_v59  ;;  %v722_v0 = vld [vmem:[#allocation5 + $0xc90] sm:$0xff]  ;;  %773 = vmatpush.msra.mxu1 %v416_v61  ;;  %v716_v4 = vld [vmem:[#allocation5 + $0xc60] sm:$0xff]  ;;  %v561_v36 = vld [vmem:[#allocation5 + $0x788] sm:$0xff] }
  0x5f   : > { %796 = vmatpush.msra.mxu2 %v512_v62  ;;  %839 = vmatpush.msrb.mxu0 %v722_v0  ;;  %v2254_v8 = vld [vmem:[%s2239_s10] sm:$0xff]  ;;  %v2258_v22 = vld [vmem:[%s2239_s10 + $0x10] sm:$0xff]  ;;  %v675_v37 = vld [vmem:[#allocation5 + $0xb18] sm:$0xff] }
  0x60   : > { %819 = vmatpush.msra.mxu3 %v608_v63  ;;  %850 = vmatpush.msrb.mxu1 %v411_v1  ;;  %v710_v10 = vld [vmem:[#allocation5 + $0xc30] sm:$0xff]  ;;  %v704_v14 = vld [vmem:[#allocation5 + $0xc00] sm:$0xff]  ;;  %v363_v38 = vld [vmem:[#allocation5 + $0x158] sm:$0xff] }
  0x61   : > { %873 = vmatpush.msrb.mxu2 %v507_v2  ;;  %840 = vmatpush.msrb.mxu0 %v716_v4  ;;  %v459_v39 = vld [vmem:[#allocation5 + $0x458] sm:$0xff]  ;;  %v669_v41 = vld [vmem:[#allocation5 + $0xae8] sm:$0xff]  ;;  %v2274_v46 = vld [vmem:[%s2239_s10 + $0x20] sm:$0xff] }
  0x62   : > { %896 = vmatpush.msrb.mxu3 %v603_v3  ;;  %851 = vmatpush.msrb.mxu1 %v405_v5  ;;  %v555_v40 = vld [vmem:[#allocation5 + $0x758] sm:$0xff]  ;;  %v357_v42 = vld [vmem:[#allocation5 + $0x128] sm:$0xff]  ;;  %v2279_v54 = vld [vmem:[%s2239_s10 + $0x30] sm:$0xff] }
  0x63   : > { %874 = vmatpush.msrb.mxu2 %v501_v6  ;;  %751 = vmatmul.f32.vlgmr.msra.gmra.mxu0 %v2254_v8  ;;  %v453_v43 = vld [vmem:[#allocation5 + $0x428] sm:$0xff]  ;;  %v663_v45 = vld [vmem:[#allocation5 + $0xab8] sm:$0xff]  ;;  %v2286_v61 = vld [vmem:[%s2239_s10 + $0x40] sm:$0xff] }
  0x64   : > { %897 = vmatpush.msrb.mxu3 %v597_v7  ;;  %852 = vmatpush.msrb.mxu1 %v399_v9  ;;  %v549_v44 = vld [vmem:[#allocation5 + $0x728] sm:$0xff]  ;;  %v351_v47 = vld [vmem:[#allocation5 + $0xf8] sm:$0xff] }
  0x65   : > { %841 = vmatpush.msrb.mxu0 %v710_v10  ;;  %875 = vmatpush.msrb.mxu2 %v495_v11  ;;  %v447_v48 = vld [vmem:[#allocation5 + $0x3f8] sm:$0xff]  ;;  %v657_v50 = vld [vmem:[#allocation5 + $0xa88] sm:$0xff] }
  0x66   : > { %898 = vmatpush.msrb.mxu3 %v591_v12  ;;  %853 = vmatpush.msrb.mxu1 %v393_v13  ;;  %v543_v49 = vld [vmem:[#allocation5 + $0x6f8] sm:$0xff]  ;;  %v345_v51 = vld [vmem:[#allocation5 + $0xc8] sm:$0xff]  ;;  %v412_v12 = vld [vmem:[#allocation5 + $0x2e0] sm:$0xff] }
  0x67   : > { %842 = vmatpush.msrb.mxu0 %v704_v14  ;;  %876 = vmatpush.msrb.mxu2 %v489_v15  ;;  %v441_v52 = vld [vmem:[#allocation5 + $0x3c8] sm:$0xff]  ;;  %v651_v55 = vld [vmem:[#allocation5 + $0xa58] sm:$0xff]  ;;  %v508_v13 = vld [vmem:[#allocation5 + $0x5e0] sm:$0xff] }
  0x68   : > { %899 = vmatpush.msrb.mxu3 %v585_v16  ;;  %854 = vmatpush.msrb.mxu1 %v387_v18  ;;  %v537_v53 = vld [vmem:[#allocation5 + $0x6c8] sm:$0xff]  ;;  %v339_v57 = vld [vmem:[#allocation5 + $0x98] sm:$0xff]  ;;  %v406_v16 = vld [vmem:[#allocation5 + $0x2b0] sm:$0xff] }
  0x69   : > { %919 = vmatpush.msra.mxu0 %v699_v17  ;;  %877 = vmatpush.msrb.mxu2 %v483_v19  ;;  %v2282_v56 = vld [vmem:[%s2239_s10 + $0x38] sm:$0xff]  ;;  %v502_v17 = vld [vmem:[#allocation5 + $0x5b0] sm:$0xff]  ;;  %v2292_v18 = vld [vmem:[%s2239_s10 + $0x48] sm:$0xff] }
  0x6a   : > { %900 = vmatpush.msrb.mxu3 %v579_v20  ;;  %797 = vmatmul.f32.vlgmr.msra.gmra.mxu2 %v2258_v22  ;;  %v435_v58 = vld [vmem:[#allocation5 + $0x398] sm:$0xff]  ;;  %v645_v60 = vld [vmem:[#allocation5 + $0xa28] sm:$0xff] }
  0x6b   : > { %920 = vmatpush.msra.mxu0 %v693_v21  ;;  %855 = vmatpush.msrb.mxu1 %v381_v23  ;;  %v531_v59 = vld [vmem:[#allocation5 + $0x698] sm:$0xff]  ;;  %v333_v62 = vld [vmem:[#allocation5 + $0x68] sm:$0xff]  ;;  %v400_v21 = vld [vmem:[#allocation5 + $0x280] sm:$0xff] }
  0x6c   : > { %878 = vmatpush.msrb.mxu2 %v477_v24  ;;  %901 = vmatpush.msrb.mxu3 %v573_v25  ;;  %v429_v63 = vld [vmem:[#allocation5 + $0x368] sm:$0xff]  ;;  %v639_v1 = vld [vmem:[#allocation5 + $0x9f8] sm:$0xff]  ;;  %v496_v23 = vld [vmem:[#allocation5 + $0x580] sm:$0xff] }
  0x6d   : > { %921 = vmatpush.msra.mxu0 %v687_v26  ;;  %820 = vmatmul.f32.vlgmr.msra.gmra.mxu3 %v2261_v27  ;;  %v525_v0 = vld [vmem:[#allocation5 + $0x668] sm:$0xff]  ;;  %v327_v2 = vld [vmem:[#allocation5 + $0x38] sm:$0xff]  ;;  %v394_v26 = vld [vmem:[#allocation5 + $0x250] sm:$0xff] }
  0x6e   : > { %754 = vmatmul.f32.gmra.mxu0 %v2265_v28  ;;  %856 = vmatpush.msrb.mxu1 %v375_v29  ;;  %v423_v3 = vld [vmem:[#allocation5 + $0x338] sm:$0xff]  ;;  %v633_v5 = vld [vmem:[#allocation5 + $0x9c8] sm:$0xff]  ;;  %v490_v29 = vld [vmem:[#allocation5 + $0x550] sm:$0xff] }
  0x6f   : > { %879 = vmatpush.msrb.mxu2 %v471_v30  ;;  %902 = vmatpush.msrb.mxu3 %v567_v31  ;;  %v519_v4 = vld [vmem:[#allocation5 + $0x638] sm:$0xff]  ;;  %v321_v6 = vld [vmem:[#allocation5 + $0x8] sm:$0xff]  ;;  %v604_v30 = vld [vmem:[#allocation5 + $0x8e0] sm:$0xff] }
  0x70   : > { %922 = vmatpush.msra.mxu0 %v681_v32  ;;  %774 = vmatmul.f32.vlgmr.msra.gmra.mxu1 %v2269_v33  ;;  %v417_v7 = vld [vmem:[#allocation5 + $0x308] sm:$0xff]  ;;  %v627_v10 = vld [vmem:[#allocation5 + $0x998] sm:$0xff]  ;;  %v700_v31 = vld [vmem:[#allocation5 + $0xbe0] sm:$0xff] }
  0x71   : > { %857 = vmatpush.msrb.mxu1 %v369_v34  ;;  %880 = vmatpush.msrb.mxu2 %v465_v35  ;;  %v513_v9 = vld [vmem:[#allocation5 + $0x608] sm:$0xff]  ;;  %v723_v11 = vld [vmem:[#allocation5 + $0xc98] sm:$0xff]  ;;  %v388_v32 = vld [vmem:[#allocation5 + $0x220] sm:$0xff] }
  0x72   : > { %903 = vmatpush.msrb.mxu3 %v561_v36  ;;  %923 = vmatpush.msra.mxu0 %v675_v37  ;;  %v621_v14 = vld [vmem:[#allocation5 + $0x968] sm:$0xff]  ;;  %v615_v19 = vld [vmem:[#allocation5 + $0x938] sm:$0xff]  ;;  %v484_v34 = vld [vmem:[#allocation5 + $0x520] sm:$0xff] }
  0x73   : > { %858 = vmatpush.msrb.mxu1 %v363_v38  ;;  %881 = vmatpush.msrb.mxu2 %v459_v39  ;;  %v717_v15 = vld [vmem:[#allocation5 + $0xc68] sm:$0xff]  ;;  %v711_v20 = vld [vmem:[#allocation5 + $0xc38] sm:$0xff]  ;;  %v598_v35 = vld [vmem:[#allocation5 + $0x8b0] sm:$0xff] }
  0x74   : > { %904 = vmatpush.msrb.mxu3 %v555_v40  ;;  %924 = vmatpush.msra.mxu0 %v669_v41  ;;  %v609_v24 = vld [vmem:[#allocation5 + $0x908] sm:$0xff]  ;;  %v694_v36 = vld [vmem:[#allocation5 + $0xbb0] sm:$0xff]  ;;  %v688_v39 = vld [vmem:[#allocation5 + $0xb80] sm:$0xff] }
  0x75   : > { %859 = vmatpush.msrb.mxu1 %v357_v42  ;;  %882 = vmatpush.msrb.mxu2 %v453_v43  ;;  %v705_v25 = vld [vmem:[#allocation5 + $0xc08] sm:$0xff]  ;;  %v382_v37 = vld [vmem:[#allocation5 + $0x1f0] sm:$0xff]  ;;  %v592_v40 = vld [vmem:[#allocation5 + $0x880] sm:$0xff] }
  0x76   : > { %905 = vmatpush.msrb.mxu3 %v549_v44  ;;  %925 = vmatpush.msra.mxu0 %v663_v45  ;;  %v478_v38 = vld [vmem:[#allocation5 + $0x4f0] sm:$0xff]  ;;  %v376_v41 = vld [vmem:[#allocation5 + $0x1c0] sm:$0xff] }
  0x77   : > { %1722 = vmatmul.msk.f32.vlgmr.msrb.gmra.mxu0 %vm728_vm0, %v2274_v46  ;;  %860 = vmatpush.msrb.mxu1 %v351_v47  ;;  %v472_v42 = vld [vmem:[#allocation5 + $0x4c0] sm:$0xff]  ;;  %v586_v43 = vld [vmem:[#allocation5 + $0x850] sm:$0xff] }
  0x78   : > { %883 = vmatpush.msrb.mxu2 %v447_v48  ;;  %906 = vmatpush.msrb.mxu3 %v543_v49  ;;  %v682_v44 = vld [vmem:[#allocation5 + $0xb50] sm:$0xff]  ;;  %v580_v48 = vld [vmem:[#allocation5 + $0x820] sm:$0xff] }
  0x79   : > { %926 = vmatpush.msra.mxu0 %v657_v50  ;;  %861 = vmatpush.msrb.mxu1 %v345_v51  ;;  %v370_v45 = vld [vmem:[#allocation5 + $0x190] sm:$0xff]  ;;  %v676_v49 = vld [vmem:[#allocation5 + $0xb20] sm:$0xff] }
  0x7a   : > { %884 = vmatpush.msrb.mxu2 %v441_v52  ;;  %907 = vmatpush.msrb.mxu3 %v537_v53  ;;  %v466_v47 = vld [vmem:[#allocation5 + $0x490] sm:$0xff]  ;;  %v364_v50 = vld [vmem:[#allocation5 + $0x160] sm:$0xff] }
  0x7b   : > { %777 = vmatmul.f32.gmra.mxu1 %v2279_v54  ;;  %927 = vmatpush.msra.mxu0 %v651_v55  ;;  %v460_v51 = vld [vmem:[#allocation5 + $0x460] sm:$0xff]  ;;  %v574_v52 = vld [vmem:[#allocation5 + $0x7f0] sm:$0xff] }
  0x7c   : > { %800 = vmatmul.f32.gmra.mxu2 %v2282_v56  ;;  %862 = vmatpush.msrb.mxu1 %v339_v57  ;;  %v670_v53 = vld [vmem:[#allocation5 + $0xaf0] sm:$0xff] }
  0x7d   : > { %885 = vmatpush.msrb.mxu2 %v435_v58  ;;  %908 = vmatpush.msrb.mxu3 %v531_v59  ;;  %v358_v55 = vld [vmem:[#allocation5 + $0x130] sm:$0xff]  ;;  %v568_v58 = vld [vmem:[#allocation5 + $0x7c0] sm:$0xff] }
  0x7e   : > { %928 = vmatpush.msra.mxu0 %v645_v60  ;;  %823 = vmatmul.f32.gmra.mxu3 %v2286_v61  ;;  %v454_v57 = vld [vmem:[#allocation5 + $0x430] sm:$0xff]  ;;  %v664_v59 = vld [vmem:[#allocation5 + $0xac0] sm:$0xff] }
  0x7f   : > { %863 = vmatpush.msrb.mxu1 %v333_v62  ;;  %886 = vmatpush.msrb.mxu2 %v429_v63  ;;  %v352_v60 = vld [vmem:[#allocation5 + $0x100] sm:$0xff]  ;;  %v562_v63 = vld [vmem:[#allocation5 + $0x790] sm:$0xff] }
  0x80   : > { %909 = vmatpush.msrb.mxu3 %v525_v0  ;;  %929 = vmatpush.msra.mxu0 %v639_v1  ;;  %v448_v62 = vld [vmem:[#allocation5 + $0x400] sm:$0xff]  ;;  %v658_v0 = vld [vmem:[#allocation5 + $0xa90] sm:$0xff] }
  0x81   : > { %864 = vmatpush.msrb.mxu1 %v327_v2  ;;  %887 = vmatpush.msrb.mxu2 %v423_v3  ;;  %v346_v1 = vld [vmem:[#allocation5 + $0xd0] sm:$0xff]  ;;  %v556_v3 = vld [vmem:[#allocation5 + $0x760] sm:$0xff] }
  0x82   : > { %910 = vmatpush.msrb.mxu3 %v519_v4  ;;  %930 = vmatpush.msra.mxu0 %v633_v5  ;;  %v442_v2 = vld [vmem:[#allocation5 + $0x3d0] sm:$0xff]  ;;  %v652_v4 = vld [vmem:[#allocation5 + $0xa60] sm:$0xff] }
  0x83   : > { %865 = vmatpush.msrb.mxu1 %v321_v6  ;;  %888 = vmatpush.msrb.mxu2 %v417_v7  ;;  %v340_v5 = vld [vmem:[#allocation5 + $0xa0] sm:$0xff]  ;;  %v550_v7 = vld [vmem:[#allocation5 + $0x730] sm:$0xff] }
  0x84   : > { %911 = vmatpush.msrb.mxu3 %v513_v9  ;;  %866 = vmatmul.f32.vlgmr.msrb.gmra.mxu1 %v2254_v8  ;;  %v436_v6 = vld [vmem:[#allocation5 + $0x3a0] sm:$0xff]  ;;  %v646_v9 = vld [vmem:[#allocation5 + $0xa30] sm:$0xff] }
  0x85   : > { %931 = vmatpush.msra.mxu0 %v627_v10  ;;  %954 = vmatpush.msra.mxu1 %v723_v11  ;;  %v334_v10 = vld [vmem:[#allocation5 + $0x70] sm:$0xff] }
  0x86   : > { %965 = vmatpush.msra.mxu2 %v412_v12  ;;  %988 = vmatpush.msra.mxu3 %v508_v13  ;;  %v430_v11 = vld [vmem:[#allocation5 + $0x370] sm:$0xff]  ;;  %v544_v12 = vld [vmem:[#allocation5 + $0x700] sm:$0xff] }
  0x87   : > { %889 = vmatmul.f32.vlgmr.msrb.gmra.mxu2 %v2269_v33  ;;  %932 = vmatpush.msra.mxu0 %v621_v14  ;;  %v640_v13 = vld [vmem:[#allocation5 + $0xa00] sm:$0xff] }
  0x88   : > { %955 = vmatpush.msra.mxu1 %v717_v15  ;;  %966 = vmatpush.msra.mxu2 %v406_v16  ;;  %v328_v14 = vld [vmem:[#allocation5 + $0x40] sm:$0xff]  ;;  %v538_v16 = vld [vmem:[#allocation5 + $0x6d0] sm:$0xff] }
  0x89   : > { %989 = vmatpush.msra.mxu3 %v502_v17  ;;  %1723 = vmatmul.msk.f32.gmra.mxu0 %vm728_vm0, %v2292_v18  ;;  %v424_v15 = vld [vmem:[#allocation5 + $0x340] sm:$0xff]  ;;  %v634_v17 = vld [vmem:[#allocation5 + $0x9d0] sm:$0xff] }
  0x8a   : > { %912 = vmatmul.f32.vlgmr.msrb.gmra.mxu3 %v2258_v22  ;;  %933 = vmatpush.msra.mxu0 %v615_v19  ;;  %v322_v19 = vld [vmem:[#allocation5 + $0x10] sm:$0xff] }
  0x8b   : > { %956 = vmatpush.msra.mxu1 %v711_v20  ;;  %967 = vmatpush.msra.mxu2 %v400_v21  ;;  %v418_v20 = vld [vmem:[#allocation5 + $0x310] sm:$0xff]  ;;  %v532_v21 = vld [vmem:[#allocation5 + $0x6a0] sm:$0xff] }
  0x8c   : > { %990 = vmatpush.msra.mxu3 %v496_v23  ;;  %934 = vmatpush.msra.mxu0 %v609_v24  ;;  %v628_v23 = vld [vmem:[#allocation5 + $0x9a0] sm:$0xff] }
  0x8d   : > { %957 = vmatpush.msra.mxu1 %v705_v25  ;;  %968 = vmatpush.msra.mxu2 %v394_v26  ;;  %v724_v24 = vld [vmem:[#allocation5 + $0xca0] sm:$0xff]  ;;  %v413_v25 = vld [vmem:[#allocation5 + $0x2e8] sm:$0xff]  ;;  %v526_v26 = vld [vmem:[#allocation5 + $0x670] sm:$0xff] }
  0x8e   : > { %991 = vmatpush.msra.mxu3 %v490_v29  ;;  %1011 = vmatpush.msrb.mxu0 %v604_v30  ;;  %v622_v29 = vld [vmem:[#allocation5 + $0x970] sm:$0xff] }
  0x8f   : > { %1034 = vmatpush.msrb.mxu1 %v700_v31  ;;  %969 = vmatpush.msra.mxu2 %v388_v32  ;;  %v718_v30 = vld [vmem:[#allocation5 + $0xc70] sm:$0xff]  ;;  %v407_v31 = vld [vmem:[#allocation5 + $0x2b8] sm:$0xff]  ;;  %v520_v32 = vld [vmem:[#allocation5 + $0x640] sm:$0xff] }
  0x90   : > { %869 = vmatmul.f32.gmra.mxu1 %v2265_v28  ;;  %992 = vmatpush.msra.mxu3 %v484_v34  ;;  %v616_v34 = vld [vmem:[#allocation5 + $0x940] sm:$0xff] }
  0x91   : > { %1012 = vmatpush.msrb.mxu0 %v598_v35  ;;  %1035 = vmatpush.msrb.mxu1 %v694_v36  ;;  %v712_v35 = vld [vmem:[#allocation5 + $0xc40] sm:$0xff]  ;;  %v401_v36 = vld [vmem:[#allocation5 + $0x288] sm:$0xff] }
  0x92   : > { %970 = vmatpush.msra.mxu2 %v382_v37  ;;  %993 = vmatpush.msra.mxu3 %v478_v38  ;;  %v514_v37 = vld [vmem:[#allocation5 + $0x610] sm:$0xff] }
  0x93   : > { %935 = vmatmul.f32.vlgmr.msra.gmra.mxu0 %v2261_v27  ;;  %1036 = vmatpush.msrb.mxu1 %v688_v39  ;;  %v610_v38 = vld [vmem:[#allocation5 + $0x910] sm:$0xff] }
  0x94   : > { %1013 = vmatpush.msrb.mxu0 %v592_v40  ;;  %892 = vmatmul.f32.gmra.mxu2 %v2279_v54  ;;  %v706_v39 = vld [vmem:[#allocation5 + $0xc10] sm:$0xff]  ;;  %v395_v40 = vld [vmem:[#allocation5 + $0x258] sm:$0xff] }
  0x95   : > { %971 = vmatpush.msra.mxu2 %v376_v41  ;;  %994 = vmatpush.msra.mxu3 %v472_v42  ;;  %v509_v41 = vld [vmem:[#allocation5 + $0x5e8] sm:$0xff] }
  0x96   : > { %1014 = vmatpush.msrb.mxu0 %v586_v43  ;;  %1037 = vmatpush.msrb.mxu1 %v682_v44  ;;  %v605_v42 = vld [vmem:[#allocation5 + $0x8e8] sm:$0xff] }
  0x97   : > { %915 = vmatmul.f32.gmra.mxu3 %v2282_v56  ;;  %972 = vmatpush.msra.mxu2 %v370_v45  ;;  %v701_v43 = vld [vmem:[#allocation5 + $0xbe8] sm:$0xff]  ;;  %v503_v45 = vld [vmem:[#allocation5 + $0x5b8] sm:$0xff] }
  0x98   : > { %995 = vmatpush.msra.mxu3 %v466_v47  ;;  %1015 = vmatpush.msrb.mxu0 %v580_v48  ;;  %v389_v44 = vld [vmem:[#allocation5 + $0x228] sm:$0xff]  ;;  %v599_v47 = vld [vmem:[#allocation5 + $0x8b8] sm:$0xff] }
  0x99   : > { %1038 = vmatpush.msrb.mxu1 %v676_v49  ;;  %973 = vmatpush.msra.mxu2 %v364_v50  ;;  %v695_v48 = vld [vmem:[#allocation5 + $0xbb8] sm:$0xff]  ;;  %v497_v50 = vld [vmem:[#allocation5 + $0x588] sm:$0xff] }
  0x9a   : > { %1724 = vmatmul.msk.f32.vlgmr.msra.gmra.mxu1 %vm728_vm0, %v2274_v46  ;;  %996 = vmatpush.msra.mxu3 %v460_v51  ;;  %v383_v49 = vld [vmem:[#allocation5 + $0x1f8] sm:$0xff]  ;;  %v593_v51 = vld [vmem:[#allocation5 + $0x888] sm:$0xff] }
  0x9b   : > { %1016 = vmatpush.msrb.mxu0 %v574_v52  ;;  %1039 = vmatpush.msrb.mxu1 %v670_v53  ;;  %v689_v52 = vld [vmem:[#allocation5 + $0xb88] sm:$0xff] }
  0x9c   : > { %974 = vmatpush.msra.mxu2 %v358_v55  ;;  %997 = vmatpush.msra.mxu3 %v454_v57  ;;  %v377_v53 = vld [vmem:[#allocation5 + $0x1c8] sm:$0xff]  ;;  %v491_v55 = vld [vmem:[#allocation5 + $0x558] sm:$0xff] }
  0x9d   : > { %1017 = vmatpush.msrb.mxu0 %v568_v58  ;;  %1040 = vmatpush.msrb.mxu1 %v664_v59  ;;  %v587_v57 = vld [vmem:[#allocation5 + $0x858] sm:$0xff] }
  0x9e   : > { %975 = vmatpush.msra.mxu2 %v352_v60  ;;  %998 = vmatpush.msra.mxu3 %v448_v62  ;;  %v683_v58 = vld [vmem:[#allocation5 + $0xb58] sm:$0xff]  ;;  %v485_v60 = vld [vmem:[#allocation5 + $0x528] sm:$0xff] }
  0x9f   : > { %1018 = vmatpush.msrb.mxu0 %v562_v63  ;;  %1041 = vmatpush.msrb.mxu1 %v658_v0  ;;  %v371_v59 = vld [vmem:[#allocation5 + $0x198] sm:$0xff]  ;;  %v581_v62 = vld [vmem:[#allocation5 + $0x828] sm:$0xff] }
  0xa0   : > { %938 = vmatmul.f32.gmra.mxu0 %v2286_v61  ;;  %976 = vmatpush.msra.mxu2 %v346_v1  ;;  %v677_v63 = vld [vmem:[#allocation5 + $0xb28] sm:$0xff]  ;;  %v479_v1 = vld [vmem:[#allocation5 + $0x4f8] sm:$0xff] }
  0xa1   : > { %999 = vmatpush.msra.mxu3 %v442_v2  ;;  %1019 = vmatpush.msrb.mxu0 %v556_v3  ;;  %v365_v0 = vld [vmem:[#allocation5 + $0x168] sm:$0xff]  ;;  %v575_v2 = vld [vmem:[#allocation5 + $0x7f8] sm:$0xff] }
  0xa2   : > { %1042 = vmatpush.msrb.mxu1 %v652_v4  ;;  %977 = vmatpush.msra.mxu2 %v340_v5  ;;  %v671_v3 = vld [vmem:[#allocation5 + $0xaf8] sm:$0xff]  ;;  %v473_v5 = vld [vmem:[#allocation5 + $0x4c8] sm:$0xff] }
  0xa3   : > { %1725 = vmatmul.msk.f32.gmra.mxu1 %vm728_vm0, %v2292_v18  ;;  %1000 = vmatpush.msra.mxu3 %v436_v6  ;;  %v359_v4 = vld [vmem:[#allocation5 + $0x138] sm:$0xff]  ;;  %v569_v6 = vld [vmem:[#allocation5 + $0x7c8] sm:$0xff] }
  0xa4   : > { %1020 = vmatpush.msrb.mxu0 %v550_v7  ;;  %1043 = vmatpush.msrb.mxu1 %v646_v9  ;;  %v665_v7 = vld [vmem:[#allocation5 + $0xac8] sm:$0xff] }
  0xa5   : > { %978 = vmatpush.msra.mxu2 %v334_v10  ;;  %1001 = vmatpush.msra.mxu3 %v430_v11  ;;  %v353_v9 = vld [vmem:[#allocation5 + $0x108] sm:$0xff]  ;;  %v467_v10 = vld [vmem:[#allocation5 + $0x498] sm:$0xff] }
  0xa6   : > { %1021 = vmatpush.msrb.mxu0 %v544_v12  ;;  %1044 = vmatpush.msrb.mxu1 %v640_v13  ;;  %v563_v11 = vld [vmem:[#allocation5 + $0x798] sm:$0xff] }
  0xa7   : > { %979 = vmatpush.msra.mxu2 %v328_v14  ;;  %1002 = vmatpush.msra.mxu3 %v424_v15  ;;  %v659_v12 = vld [vmem:[#allocation5 + $0xa98] sm:$0xff]  ;;  %v461_v14 = vld [vmem:[#allocation5 + $0x468] sm:$0xff] }
  0xa8   : > { %1022 = vmatpush.msrb.mxu0 %v538_v16  ;;  %1045 = vmatpush.msrb.mxu1 %v634_v17  ;;  %v347_v13 = vld [vmem:[#allocation5 + $0xd8] sm:$0xff]  ;;  %v557_v15 = vld [vmem:[#allocation5 + $0x768] sm:$0xff] }
  0xa9   : > { %980 = vmatpush.msra.mxu2 %v322_v19  ;;  %1003 = vmatpush.msra.mxu3 %v418_v20  ;;  %v653_v16 = vld [vmem:[#allocation5 + $0xa68] sm:$0xff]  ;;  %v455_v19 = vld [vmem:[#allocation5 + $0x438] sm:$0xff] }
  0xaa   : > { %981 = vmatmul.f32.vlgmr.msra.gmra.mxu2 %v2254_v8  ;;  %1023 = vmatpush.msrb.mxu0 %v532_v21  ;;  %v341_v17 = vld [vmem:[#allocation5 + $0xa8] sm:$0xff]  ;;  %v551_v20 = vld [vmem:[#allocation5 + $0x738] sm:$0xff] }
  0xab   : > { %1046 = vmatpush.msrb.mxu1 %v628_v23  ;;  %1069 = vmatpush.msrb.mxu2 %v724_v24  ;;  %v647_v21 = vld [vmem:[#allocation5 + $0xa38] sm:$0xff]  ;;  %v449_v24 = vld [vmem:[#allocation5 + $0x408] sm:$0xff] }
  0xac   : > { %1080 = vmatpush.msrb.mxu3 %v413_v25  ;;  %1024 = vmatpush.msrb.mxu0 %v526_v26  ;;  %v335_v23 = vld [vmem:[#allocation5 + $0x78] sm:$0xff]  ;;  %v545_v25 = vld [vmem:[#allocation5 + $0x708] sm:$0xff] }
  0xad   : > { %1047 = vmatpush.msrb.mxu1 %v622_v29  ;;  %1070 = vmatpush.msrb.mxu2 %v718_v30  ;;  %v641_v26 = vld [vmem:[#allocation5 + $0xa08] sm:$0xff]  ;;  %v443_v30 = vld [vmem:[#allocation5 + $0x3d8] sm:$0xff] }
  0xae   : > { %1081 = vmatpush.msrb.mxu3 %v407_v31  ;;  %1025 = vmatpush.msrb.mxu0 %v520_v32  ;;  %v329_v29 = vld [vmem:[#allocation5 + $0x48] sm:$0xff]  ;;  %v539_v31 = vld [vmem:[#allocation5 + $0x6d8] sm:$0xff] }
  0xaf   : > { %1048 = vmatpush.msrb.mxu1 %v616_v34  ;;  %1071 = vmatpush.msrb.mxu2 %v712_v35  ;;  %v635_v32 = vld [vmem:[#allocation5 + $0x9d8] sm:$0xff]  ;;  %v437_v35 = vld [vmem:[#allocation5 + $0x3a8] sm:$0xff] }
  0xb0   : > { %1082 = vmatpush.msrb.mxu3 %v401_v36  ;;  %1026 = vmatpush.msrb.mxu0 %v514_v37  ;;  %v323_v34 = vld [vmem:[#allocation5 + $0x18] sm:$0xff]  ;;  %v533_v36 = vld [vmem:[#allocation5 + $0x6a8] sm:$0xff] }
  0xb1   : > { %1049 = vmatpush.msrb.mxu1 %v610_v38  ;;  %1072 = vmatpush.msrb.mxu2 %v706_v39  ;;  %v629_v37 = vld [vmem:[#allocation5 + $0x9a8] sm:$0xff]  ;;  %v431_v38 = vld [vmem:[#allocation5 + $0x378] sm:$0xff] }
  0xb2   : > { %1083 = vmatpush.msrb.mxu3 %v395_v40  ;;  %1103 = vmatpush.msra.mxu0 %v509_v41  ;;  %v725_v39 = vld [vmem:[#allocation5 + $0xca8] sm:$0xff]  ;;  %v527_v40 = vld [vmem:[#allocation5 + $0x678] sm:$0xff] }
  0xb3   : > { %1126 = vmatpush.msra.mxu1 %v605_v42  ;;  %1149 = vmatpush.msra.mxu2 %v701_v43  ;;  %v623_v41 = vld [vmem:[#allocation5 + $0x978] sm:$0xff]  ;;  %v425_v42 = vld [vmem:[#allocation5 + $0x348] sm:$0xff] }
  0xb4   : > { %984 = vmatmul.f32.gmra.mxu2 %v2265_v28  ;;  %1084 = vmatpush.msrb.mxu3 %v389_v44  ;;  %v719_v43 = vld [vmem:[#allocation5 + $0xc78] sm:$0xff]  ;;  %v521_v44 = vld [vmem:[#allocation5 + $0x648] sm:$0xff] }
  0xb5   : > { %1104 = vmatpush.msra.mxu0 %v503_v45  ;;  %1127 = vmatpush.msra.mxu1 %v599_v47  ;;  %v617_v45 = vld [vmem:[#allocation5 + $0x948] sm:$0xff]  ;;  %v419_v47 = vld [vmem:[#allocation5 + $0x318] sm:$0xff] }
  0xb6   : > { %1150 = vmatpush.msra.mxu2 %v695_v48  ;;  %1004 = vmatmul.f32.vlgmr.msra.gmra.mxu3 %v2269_v33  ;;  %v713_v48 = vld [vmem:[#allocation5 + $0xc48] sm:$0xff] }
  0xb7   : > { %1085 = vmatpush.msrb.mxu3 %v383_v49  ;;  %1105 = vmatpush.msra.mxu0 %v497_v50  ;;  %v515_v49 = vld [vmem:[#allocation5 + $0x618] sm:$0xff] }
  0xb8   : > { %1128 = vmatpush.msra.mxu1 %v593_v51  ;;  %1151 = vmatpush.msra.mxu2 %v689_v52  ;;  %v611_v50 = vld [vmem:[#allocation5 + $0x918] sm:$0xff]  ;;  %v510_v51 = vld [vmem:[#allocation5 + $0x5f0] sm:$0xff] }
  0xb9   : > { %1086 = vmatpush.msrb.mxu3 %v377_v53  ;;  %1106 = vmatpush.msra.mxu0 %v491_v55  ;;  %v606_v52 = vld [vmem:[#allocation5 + $0x8f0] sm:$0xff]  ;;  %v707_v53 = vld [vmem:[#allocation5 + $0xc18] sm:$0xff]  ;;  %v408_v55 = vld [vmem:[#allocation5 + $0x2c0] sm:$0xff] }
  0xba   : > { %1129 = vmatpush.msra.mxu1 %v587_v57  ;;  %1152 = vmatpush.msra.mxu2 %v683_v58  ;;  %v504_v57 = vld [vmem:[#allocation5 + $0x5c0] sm:$0xff] }
  0xbb   : > { %1087 = vmatpush.msrb.mxu3 %v371_v59  ;;  %1107 = vmatpush.msra.mxu0 %v485_v60  ;;  %v600_v58 = vld [vmem:[#allocation5 + $0x8c0] sm:$0xff]  ;;  %v702_v59 = vld [vmem:[#allocation5 + $0xbf0] sm:$0xff] }
  0xbc   : > { %1130 = vmatpush.msra.mxu1 %v581_v62  ;;  %1153 = vmatpush.msra.mxu2 %v677_v63  ;;  %v402_v60 = vld [vmem:[#allocation5 + $0x290] sm:$0xff] }
  0xbd   : > { %1726 = vmatmul.msk.f32.vlgmr.msrb.gmra.mxu2 %vm728_vm0, %v2274_v46  ;;  %1088 = vmatpush.msrb.mxu3 %v365_v0  ;;  %v498_v62 = vld [vmem:[#allocation5 + $0x590] sm:$0xff]  ;;  %v696_v0 = vld [vmem:[#allocation5 + $0xbc0] sm:$0xff] }
  0xbe   : > { %1108 = vmatpush.msra.mxu0 %v479_v1  ;;  %1131 = vmatpush.msra.mxu1 %v575_v2  ;;  %v594_v63 = vld [vmem:[#allocation5 + $0x890] sm:$0xff]  ;;  %v396_v1 = vld [vmem:[#allocation5 + $0x260] sm:$0xff] }
  0xbf   : > { %1154 = vmatpush.msra.mxu2 %v671_v3  ;;  %1007 = vmatmul.f32.gmra.mxu3 %v2279_v54  ;;  %v492_v2 = vld [vmem:[#allocation5 + $0x560] sm:$0xff] }
  0xc0   : > { %1027 = vmatmul.f32.vlgmr.msrb.gmra.mxu0 %v2258_v22  ;;  %1089 = vmatpush.msrb.mxu3 %v359_v4  ;;  %v588_v3 = vld [vmem:[#allocation5 + $0x860] sm:$0xff]  ;;  %v690_v4 = vld [vmem:[#allocation5 + $0xb90] sm:$0xff] }
  0xc1   : > { %1109 = vmatpush.msra.mxu0 %v473_v5  ;;  %1132 = vmatpush.msra.mxu1 %v569_v6  ;;  %v486_v5 = vld [vmem:[#allocation5 + $0x530] sm:$0xff] }
  0xc2   : > { %1155 = vmatpush.msra.mxu2 %v665_v7  ;;  %1050 = vmatmul.f32.vlgmr.msrb.gmra.mxu1 %v2261_v27  ;;  %v582_v6 = vld [vmem:[#allocation5 + $0x830] sm:$0xff]  ;;  %v684_v7 = vld [vmem:[#allocation5 + $0xb60] sm:$0xff] }
  0xc3   : > { %1090 = vmatpush.msrb.mxu3 %v353_v9  ;;  %1110 = vmatpush.msra.mxu0 %v467_v10  ;;  %v384_v9 = vld [vmem:[#allocation5 + $0x200] sm:$0xff] }
  0xc4   : > { %1133 = vmatpush.msra.mxu1 %v563_v11  ;;  %1156 = vmatpush.msra.mxu2 %v659_v12  ;;  %v480_v10 = vld [vmem:[#allocation5 + $0x500] sm:$0xff]  ;;  %v678_v12 = vld [vmem:[#allocation5 + $0xb30] sm:$0xff] }
  0xc5   : > { %1091 = vmatpush.msrb.mxu3 %v347_v13  ;;  %1111 = vmatpush.msra.mxu0 %v461_v14  ;;  %v576_v11 = vld [vmem:[#allocation5 + $0x800] sm:$0xff]  ;;  %v378_v14 = vld [vmem:[#allocation5 + $0x1d0] sm:$0xff] }
  0xc6   : > { %1134 = vmatpush.msra.mxu1 %v557_v15  ;;  %1157 = vmatpush.msra.mxu2 %v653_v16  ;;  %v474_v15 = vld [vmem:[#allocation5 + $0x4d0] sm:$0xff] }
  0xc7   : > { %1727 = vmatmul.msk.f32.gmra.mxu2 %vm728_vm0, %v2292_v18  ;;  %1092 = vmatpush.msrb.mxu3 %v341_v17  ;;  %v570_v16 = vld [vmem:[#allocation5 + $0x7d0] sm:$0xff]  ;;  %v372_v17 = vld [vmem:[#allocation5 + $0x1a0] sm:$0xff] }
  0xc8   : > { %1112 = vmatpush.msra.mxu0 %v455_v19  ;;  %1135 = vmatpush.msra.mxu1 %v551_v20  ;;  %v468_v19 = vld [vmem:[#allocation5 + $0x4a0] sm:$0xff] }
  0xc9   : > { %1158 = vmatpush.msra.mxu2 %v647_v21  ;;  %1030 = vmatmul.f32.gmra.mxu0 %v2282_v56  ;;  %v564_v20 = vld [vmem:[#allocation5 + $0x7a0] sm:$0xff]  ;;  %v462_v21 = vld [vmem:[#allocation5 + $0x470] sm:$0xff] }
  0xca   : > { %1093 = vmatpush.msrb.mxu3 %v335_v23  ;;  %1113 = vmatpush.msra.mxu0 %v449_v24  ;;  %v558_v23 = vld [vmem:[#allocation5 + $0x770] sm:$0xff]  ;;  %v660_v24 = vld [vmem:[#allocation5 + $0xaa0] sm:$0xff] }
  0xcb   : > { %1136 = vmatpush.msra.mxu1 %v545_v25  ;;  %1159 = vmatpush.msra.mxu2 %v641_v26  ;;  %v456_v25 = vld [vmem:[#allocation5 + $0x440] sm:$0xff] }
  0xcc   : > { %1053 = vmatmul.f32.gmra.mxu1 %v2286_v61  ;;  %1094 = vmatpush.msrb.mxu3 %v329_v29  ;;  %v552_v26 = vld [vmem:[#allocation5 + $0x740] sm:$0xff]  ;;  %v654_v29 = vld [vmem:[#allocation5 + $0xa70] sm:$0xff] }
  0xcd   : > { %1114 = vmatpush.msra.mxu0 %v443_v30  ;;  %1137 = vmatpush.msra.mxu1 %v539_v31  ;;  %v354_v31 = vld [vmem:[#allocation5 + $0x110] sm:$0xff] }
  0xce   : > { %1160 = vmatpush.msra.mxu2 %v635_v32  ;;  %1095 = vmatpush.msrb.mxu3 %v323_v34  ;;  %v450_v32 = vld [vmem:[#allocation5 + $0x410] sm:$0xff] }
  0xcf   : > { %1096 = vmatmul.f32.vlgmr.msrb.gmra.mxu3 %v2254_v8  ;;  %1115 = vmatpush.msra.mxu0 %v437_v35  ;;  %v414_v8 = vld [vmem:[#allocation5 + $0x2f0] sm:$0xff]  ;;  %v648_v35 = vld [vmem:[#allocation5 + $0xa40] sm:$0xff] }
  0xd0   : > { %1138 = vmatpush.msra.mxu1 %v533_v36  ;;  %1161 = vmatpush.msra.mxu2 %v629_v37  ;;  %v348_v36 = vld [vmem:[#allocation5 + $0xe0] sm:$0xff] }
  0xd1   : > { %1116 = vmatpush.msra.mxu0 %v431_v38  ;;  %1184 = vmatpush.msra.mxu3 %v725_v39  ;;  %v444_v39 = vld [vmem:[#allocation5 + $0x3e0] sm:$0xff] }
  0xd2   : > { %1139 = vmatpush.msra.mxu1 %v527_v40  ;;  %1162 = vmatpush.msra.mxu2 %v623_v41  ;;  %v342_v40 = vld [vmem:[#allocation5 + $0xb0] sm:$0xff] }
  0xd3   : > { %1117 = vmatpush.msra.mxu0 %v425_v42  ;;  %1185 = vmatpush.msra.mxu3 %v719_v43  ;;  %v438_v43 = vld [vmem:[#allocation5 + $0x3b0] sm:$0xff] }
  0xd4   : > { %1140 = vmatpush.msra.mxu1 %v521_v44  ;;  %1163 = vmatpush.msra.mxu2 %v617_v45  ;;  %v534_v44 = vld [vmem:[#allocation5 + $0x6b0] sm:$0xff]  ;;  %v636_v45 = vld [vmem:[#allocation5 + $0x9e0] sm:$0xff] }
  0xd5   : > { %1118 = vmatpush.msra.mxu0 %v419_v47  ;;  %1186 = vmatpush.msra.mxu3 %v713_v48  ;;  %v336_v47 = vld [vmem:[#allocation5 + $0x80] sm:$0xff] }
  0xd6   : > { %1141 = vmatpush.msra.mxu1 %v515_v49  ;;  %1164 = vmatpush.msra.mxu2 %v611_v50  ;;  %v528_v49 = vld [vmem:[#allocation5 + $0x680] sm:$0xff]  ;;  %v630_v50 = vld [vmem:[#allocation5 + $0x9b0] sm:$0xff] }
  0xd7   : > { %1195 = vmatpush.msrb.mxu0 %v414_v8  ;;  %1099 = vmatmul.f32.gmra.mxu3 %v2265_v28  ;;  %v390_v28 = vld [vmem:[#allocation5 + $0x230] sm:$0xff] }
  0xd8   : > { %1218 = vmatpush.msrb.mxu1 %v510_v51  ;;  %1241 = vmatpush.msrb.mxu2 %v606_v52  ;;  %v330_v8 = vld [vmem:[#allocation5 + $0x50] sm:$0xff] }
  0xd9   : > { %1187 = vmatpush.msra.mxu3 %v707_v53  ;;  %1196 = vmatpush.msrb.mxu0 %v408_v55  ;;  %v426_v52 = vld [vmem:[#allocation5 + $0x350] sm:$0xff] }
  0xda   : > { %1219 = vmatpush.msrb.mxu1 %v504_v57  ;;  %1242 = vmatpush.msrb.mxu2 %v600_v58  ;;  %v522_v53 = vld [vmem:[#allocation5 + $0x650] sm:$0xff]  ;;  %v624_v57 = vld [vmem:[#allocation5 + $0x980] sm:$0xff] }
  0xdb   : > { %1264 = vmatpush.msrb.mxu3 %v702_v59  ;;  %1197 = vmatpush.msrb.mxu0 %v402_v60  ;;  %v324_v58 = vld [vmem:[#allocation5 + $0x20] sm:$0xff] }
  0xdc   : > { %1220 = vmatpush.msrb.mxu1 %v498_v62  ;;  %1243 = vmatpush.msrb.mxu2 %v594_v63  ;;  %v420_v59 = vld [vmem:[#allocation5 + $0x320] sm:$0xff]  ;;  %v618_v62 = vld [vmem:[#allocation5 + $0x950] sm:$0xff] }
  0xdd   : > { %1265 = vmatpush.msrb.mxu3 %v696_v0  ;;  %1198 = vmatpush.msrb.mxu0 %v396_v1  ;;  %v516_v60 = vld [vmem:[#allocation5 + $0x620] sm:$0xff]  ;;  %v415_v0 = vld [vmem:[#allocation5 + $0x2f8] sm:$0xff] }
  0xde   : > { %1221 = vmatpush.msrb.mxu1 %v492_v2  ;;  %1244 = vmatpush.msrb.mxu2 %v588_v3  ;;  %v511_v1 = vld [vmem:[#allocation5 + $0x5f8] sm:$0xff]  ;;  %v612_v3 = vld [vmem:[#allocation5 + $0x920] sm:$0xff] }
  0xdf   : > { %1266 = vmatpush.msrb.mxu3 %v690_v4  ;;  %1165 = vmatmul.f32.vlgmr.msra.gmra.mxu2 %v2261_v27  ;;  %v672_v27 = vld [vmem:[#allocation5 + $0xb00] sm:$0xff]  ;;  %v726_v4 = vld [vmem:[#allocation5 + $0xcb0] sm:$0xff] }
  0xe0   : > { %1199 = vmatpush.msrb.mxu0 %v390_v28  ;;  %1222 = vmatpush.msrb.mxu1 %v486_v5  ;;  %v752_v13 = vpop.f32.mrf.mxu0  ;;  %v2337_v28 = vld [vmem:[%s2239_s10] sm:$0xff]  ;;  %v409_v5 = vld [vmem:[#allocation5 + $0x2c8] sm:$0xff] }
  0xe1   : > { %1245 = vmatpush.msrb.mxu2 %v582_v6  ;;  %1267 = vmatpush.msrb.mxu3 %v684_v7  ;;  %v505_v6 = vld [vmem:[#allocation5 + $0x5c8] sm:$0xff]  ;;  %v607_v7 = vld [vmem:[#allocation5 + $0x8f8] sm:$0xff] }
  0xe2   : > { %1119 = vmatmul.f32.vlgmr.msra.gmra.mxu0 %v2269_v33  ;;  %1728 = vmatmul.msk.f32.vlgmr.msra.gmra.mxu3 %vm728_vm0, %v2274_v46  ;;  %v666_v33 = vld [vmem:[#allocation5 + $0xad0] sm:$0xff] }
  0xe3   : > { %1200 = vmatpush.msrb.mxu0 %v384_v9  ;;  %1223 = vmatpush.msrb.mxu1 %v480_v10  ;;  %v366_v46 = vld [vmem:[#allocation5 + $0x170] sm:$0xff]  ;;  %v720_v9 = vld [vmem:[#allocation5 + $0xc80] sm:$0xff]  ;;  %v403_v10 = vld [vmem:[#allocation5 + $0x298] sm:$0xff] }
  0xe4   : > { %1246 = vmatpush.msrb.mxu2 %v576_v11  ;;  %1268 = vmatpush.msrb.mxu3 %v678_v12  ;;  %v499_v11 = vld [vmem:[#allocation5 + $0x598] sm:$0xff]  ;;  %v601_v12 = vld [vmem:[#allocation5 + $0x8c8] sm:$0xff] }
  0xe5   : > { %1142 = vmatmul.f32.vlgmr.msra.gmra.mxu1 %v2258_v22  ;;  %1201 = vmatpush.msrb.mxu0 %v378_v14  ;;  %v360_v22 = vld [vmem:[#allocation5 + $0x140] sm:$0xff]  ;;  %v493_v14 = vld [vmem:[#allocation5 + $0x568] sm:$0xff] }
  0xe6   : > { %1224 = vmatpush.msrb.mxu1 %v474_v15  ;;  %1247 = vmatpush.msrb.mxu2 %v570_v16  ;;  %v595_v16 = vld [vmem:[#allocation5 + $0x898] sm:$0xff] }
  0xe7   : > { %1269 = vmatpush.msrb.mxu3 %v672_v27  ;;  %1202 = vmatpush.msrb.mxu0 %v372_v17  ;;  %v714_v27 = vld [vmem:[#allocation5 + $0xc50] sm:$0xff] }
  0xe8   : > { %1225 = vmatpush.msrb.mxu1 %v468_v19  ;;  %1248 = vmatpush.msrb.mxu2 %v564_v20  ;;  %v2341_v19 = vld [vmem:[%s2239_s10 + $0x10] sm:$0xff] }
  0xe9   : > { %1270 = vmatpush.msrb.mxu3 %v666_v33  ;;  %1168 = vmatmul.f32.gmra.mxu2 %v2286_v61  ;;  %v546_v61 = vld [vmem:[#allocation5 + $0x710] sm:$0xff]  ;;  %v391_v33 = vld [vmem:[#allocation5 + $0x238] sm:$0xff] }
  0xea   : > { %1203 = vmatpush.msrb.mxu0 %v366_v46  ;;  %1226 = vmatpush.msrb.mxu1 %v462_v21  ;;  %v487_v46 = vld [vmem:[#allocation5 + $0x538] sm:$0xff] }
  0xeb   : > { %1249 = vmatpush.msrb.mxu2 %v558_v23  ;;  %1271 = vmatpush.msrb.mxu3 %v660_v24  ;;  %v2327_v30 = vpop.f32.mrf.mxu0  ;;  %v589_v23 = vld [vmem:[#allocation5 + $0x868] sm:$0xff]  ;;  %v708_v24 = vld [vmem:[#allocation5 + $0xc20] sm:$0xff] }
  0xec   : > { %1122 = vmatmul.f32.gmra.mxu0 %v2279_v54  ;;  %1729 = vmatmul.msk.f32.gmra.mxu3 %vm728_vm0, %v2292_v18  ;;  %v540_v54 = vld [vmem:[#allocation5 + $0x6e0] sm:$0xff]  ;;  %v642_v18 = vld [vmem:[#allocation5 + $0xa10] sm:$0xff] }
  0xed   : > { %1204 = vmatpush.msrb.mxu0 %v360_v22  ;;  %1227 = vmatpush.msrb.mxu1 %v456_v25  ;;  %v775_v34 = vpop.f32.mrf.mxu1  ;;  %v798_v38 = vpop.f32.mrf.mxu2  ;;  %v2345_v25 = vld [vmem:[%s2239_s10 + $0x28] sm:$0xff] }
  0xee   : > { %1250 = vmatpush.msrb.mxu2 %v552_v26  ;;  %1272 = vmatpush.msrb.mxu3 %v654_v29  ;;  %v776_v37 = vadd.f32 %v775_v34, %v752_v13  ;;  %v397_v13 = vld [vmem:[#allocation5 + $0x268] sm:$0xff] }
  0xef   : > { %1145 = vmatmul.f32.gmra.mxu1 %v2282_v56  ;;  %1205 = vmatpush.msrb.mxu0 %v354_v31  ;;  %v432_v56 = vld [vmem:[#allocation5 + $0x380] sm:$0xff]  ;;  %v2349_v26 = vld [vmem:[%s2239_s10 + $0x18] sm:$0xff] }
  0xf0   : > { %1228 = vmatpush.msrb.mxu1 %v450_v32  ;;  %1251 = vmatpush.msrb.mxu2 %v546_v61  ;;  %v799_v41 = vadd.f32 %v798_v38, %v776_v37  ;;  %v821_v42 = vpop.f32.mrf.mxu3  ;;  %v481_v29 = vld [vmem:[#allocation5 + $0x508] sm:$0xff]  ;;  %v583_v31 = vld [vmem:[#allocation5 + $0x838] sm:$0xff] }
  0xf1   : > { %1273 = vmatpush.msrb.mxu3 %v648_v35  ;;  %1206 = vmatpush.msrb.mxu0 %v348_v36  ;;  %v703_v32 = vld [vmem:[#allocation5 + $0xbf8] sm:$0xff]  ;;  %v577_v37 = vld [vmem:[#allocation5 + $0x808] sm:$0xff] }
  0xf2   : > { %1229 = vmatpush.msrb.mxu1 %v444_v39  ;;  %1252 = vmatpush.msrb.mxu2 %v540_v54  ;;  %v822_v48 = vadd.f32 %v821_v42, %v799_v41  ;;  %v475_v61 = vld [vmem:[#allocation5 + $0x4d8] sm:$0xff]  ;;  %v697_v39 = vld [vmem:[#allocation5 + $0xbc8] sm:$0xff] }
  0xf3   : > { %1274 = vmatpush.msrb.mxu3 %v642_v18  ;;  %1207 = vmatpush.msrb.mxu0 %v342_v40  ;;  %v2353_v35 = vld [vmem:[%s2239_s10 + $0x8] sm:$0xff] }
  0xf4   : > { %1230 = vmatpush.msrb.mxu1 %v438_v43  ;;  %1253 = vmatpush.msrb.mxu2 %v534_v44  ;;  %v844_v51 = vpop.f32.mrf.mxu0  ;;  %v379_v36 = vld [vmem:[#allocation5 + $0x1d8] sm:$0xff]  ;;  %v373_v54 = vld [vmem:[#allocation5 + $0x1a8] sm:$0xff] }
  0xf5   : > { %1275 = vmatpush.msrb.mxu3 %v636_v45  ;;  %1208 = vmatpush.msrb.mxu0 %v336_v47  ;;  %v2333_v55 = vadd.f32 %v844_v51, %v822_v48  ;;  %v469_v18 = vld [vmem:[#allocation5 + $0x4a8] sm:$0xff]  ;;  %v571_v40 = vld [vmem:[#allocation5 + $0x7d8] sm:$0xff]  ;;  %v2367_v51 = vld [vmem:[%s2239_s10 + $0x20] sm:$0xff] }
  0xf6   : > { %1231 = vmatpush.msrb.mxu1 %v432_v56  ;;  %1254 = vmatpush.msrb.mxu2 %v528_v49  ;;  %v691_v41 = vld [vmem:[#allocation5 + $0xb98] sm:$0xff]  ;;  %v565_v48 = vld [vmem:[#allocation5 + $0x7a8] sm:$0xff] }
  0xf7   : > { %1276 = vmatpush.msrb.mxu3 %v630_v50  ;;  %1209 = vmatpush.msrb.mxu0 %v330_v8  ;;  %v2359_v43 = vld [vmem:[%s2239_s10 + $0x38] sm:$0xff]  ;;  %v2363_v8 = vld [vmem:[%s2239_s10 + $0x40] sm:$0xff] }
  0xf8   : > { %1232 = vmatpush.msrb.mxu1 %v426_v52  ;;  %1255 = vmatpush.msrb.mxu2 %v522_v53  ;;  %v778_v63 = vpop.f32.mrf.mxu1  ;;  %v367_v45 = vld [vmem:[#allocation5 + $0x178] sm:$0xff]  ;;  %v685_v56 = vld [vmem:[#allocation5 + $0xb68] sm:$0xff] }
  0xf9   : > { %1277 = vmatpush.msrb.mxu3 %v624_v57  ;;  %1210 = vmatpush.msrb.mxu0 %v324_v58  ;;  %v779_v2 = vadd.f32 %v778_v63, %v2327_v30  ;;  %v385_v30 = vld [vmem:[#allocation5 + $0x208] sm:$0xff]  ;;  %v463_v47 = vld [vmem:[#allocation5 + $0x478] sm:$0xff]  ;;  %v2372_v63 = vld [vmem:[%s2239_s10 + $0x30] sm:$0xff] }
  0xfa   : > { %1233 = vmatpush.msrb.mxu1 %v420_v59  ;;  %1256 = vmatpush.msrb.mxu2 %v516_v60  ;;  %v457_v52 = vld [vmem:[#allocation5 + $0x448] sm:$0xff]  ;;  %v559_v58 = vld [vmem:[#allocation5 + $0x778] sm:$0xff] }
  0xfb   : > { %1278 = vmatpush.msrb.mxu3 %v618_v62  ;;  %1211 = vmatmul.f32.vlgmr.msrb.gmra.mxu0 %v2337_v28  ;;  %v361_v57 = vld [vmem:[#allocation5 + $0x148] sm:$0xff]  ;;  %v679_v59 = vld [vmem:[#allocation5 + $0xb38] sm:$0xff] }
  0xfc   : > { %1310 = vmatpush.msra.mxu1 %v415_v0  ;;  %1333 = vmatpush.msra.mxu2 %v511_v1  ;;  %v451_v60 = vld [vmem:[#allocation5 + $0x418] sm:$0xff]  ;;  %v553_v1 = vld [vmem:[#allocation5 + $0x748] sm:$0xff] }
  0xfd   : > { %1279 = vmatpush.msrb.mxu3 %v612_v3  ;;  %1299 = vmatpush.msra.mxu0 %v726_v4  ;;  %v355_v0 = vld [vmem:[#allocation5 + $0x118] sm:$0xff]  ;;  %v1431_v3 = vlaneseq  ;;  %v673_v4 = vld [vmem:[#allocation5 + $0xb08] sm:$0xff] }
  0xfe   : > { %1311 = vmatpush.msra.mxu1 %v409_v5  ;;  %1334 = vmatpush.msra.mxu2 %v505_v6  ;;  %v445_v5 = vld [vmem:[#allocation5 + $0x3e8] sm:$0xff] }
  0xff   : > { %1356 = vmatpush.msra.mxu3 %v607_v7  ;;  %1300 = vmatpush.msra.mxu0 %v720_v9  ;;  %v801_v15 = vpop.f32.mrf.mxu2  ;;  %v349_v6 = vld [vmem:[#allocation5 + $0xe8] sm:$0xff]  ;;  %v547_v7 = vld [vmem:[#allocation5 + $0x718] sm:$0xff] }
 0x100   : > { %1312 = vmatpush.msra.mxu1 %v403_v10  ;;  %1335 = vmatpush.msra.mxu2 %v499_v11  ;;  %v802_v17 = vadd.f32 %v801_v15, %v779_v2  ;;  %v667_v9 = vld [vmem:[#allocation5 + $0xad8] sm:$0xff]  ;;  %v337_v15 = vld [vmem:[#allocation5 + $0x88] sm:$0xff] }
 0x101   : > { %1357 = vmatpush.msra.mxu3 %v601_v12  ;;  %1257 = vmatmul.f32.vlgmr.msrb.gmra.mxu2 %v2341_v19  ;;  %v824_v20 = vpop.f32.mrf.mxu3  ;;  %v867_v22 = vpop.f32.mrf.mxu1  ;;  %v439_v10 = vld [vmem:[#allocation5 + $0x3b8] sm:$0xff]  ;;  %v2375_v12 = vand.u32 127, %v1431_v3  ;;  %v709_v3 = vld [vmem:[#allocation5 + $0xc28] sm:$0xff] }
 0x102   : > { %1313 = vmatpush.msra.mxu1 %v397_v13  ;;  %1336 = vmatpush.msra.mxu2 %v493_v14  ;;  %v825_v21 = vadd.f32 %v824_v20, %v802_v17  ;;  %v343_v11 = vld [vmem:[#allocation5 + $0xb8] sm:$0xff]  ;;  %v541_v13 = vld [vmem:[#allocation5 + $0x6e8] sm:$0xff]  ;;  %v2377_v20 = vld [vmem:[#allocation7] ss:$0 sm:$0xff] }
 0x103   : > { %1358 = vmatpush.msra.mxu3 %v595_v16  ;;  %1301 = vmatpush.msra.mxu0 %v714_v27  ;;  %v661_v14 = vld [vmem:[#allocation5 + $0xaa8] sm:$0xff]  ;;  %vm1433_vm1 = vcmp.lt.s32.totalorder %v2375_v12, 64 }
 0x104   : > { %1214 = vmatmul.f32.gmra.mxu0 %v2345_v25  ;;  %1280 = vmatmul.f32.vlgmr.msrb.gmra.mxu3 %v2349_v26  ;;  %v433_v16 = vld [vmem:[#allocation5 + $0x388] sm:$0xff] }
 0x105   : > { %1314 = vmatpush.msra.mxu1 %v391_v33  ;;  %1337 = vmatpush.msra.mxu2 %v487_v46  ;;  %v2380_v33 = vld [vmem:[%s2239_s10 + $0x48] sm:$0xff] }
 0x106   : > { %1359 = vmatpush.msra.mxu3 %v589_v23  ;;  %1302 = vmatpush.msra.mxu0 %v708_v24  ;;  %v847_v34 = vpop.f32.mrf.mxu0  ;;  %v535_v46 = vld [vmem:[#allocation5 + $0x6b8] sm:$0xff] }
 0x107   : > { %1234 = vmatmul.f32.vlgmr.msrb.gmra.mxu1 %v2353_v35  ;;  %1338 = vmatpush.msra.mxu2 %v481_v29  ;;  %v2356_v38 = vadd.f32 %v847_v34, %v825_v21  ;;  %v655_v21 = vld [vmem:[#allocation5 + $0xa78] sm:$0xff]  ;;  %v325_v34 = vld [vmem:[#allocation5 + $0x28] sm:$0xff] }
 0x108   : > { %1315 = vmatpush.msra.mxu1 %v385_v30  ;;  %1360 = vmatpush.msra.mxu3 %v583_v31  ;;  %v427_v29 = vld [vmem:[#allocation5 + $0x358] sm:$0xff]  ;;  %v529_v30 = vld [vmem:[#allocation5 + $0x688] sm:$0xff] }
 0x109   : > { %1379 = vmatpush.msrb.mxu0 %v703_v32  ;;  %1339 = vmatpush.msra.mxu2 %v475_v61  ;;  %v649_v31 = vld [vmem:[#allocation5 + $0xa48] sm:$0xff] }
 0x10a   : > { %1316 = vmatpush.msra.mxu1 %v379_v36  ;;  %1361 = vmatpush.msra.mxu3 %v577_v37  ;;  %v890_v42 = vpop.f32.mrf.mxu2  ;;  %v421_v36 = vld [vmem:[#allocation5 + $0x328] sm:$0xff] }
 0x10b   : > { %1380 = vmatpush.msrb.mxu0 %v697_v39  ;;  %1260 = vmatmul.f32.gmra.mxu2 %v2359_v43  ;;  %v891_v44 = vadd.f32 %v890_v42, %v867_v22  ;;  %v331_v22 = vld [vmem:[#allocation5 + $0x58] sm:$0xff]  ;;  %v1429_v39 = vadd.f32 %v2377_v20, %v2333_v55  ;;  %v637_v55 = vld [vmem:[#allocation5 + $0x9e8] sm:$0xff] }
 0x10c   : > { %1317 = vmatpush.msra.mxu1 %v373_v54  ;;  %1340 = vmatpush.msra.mxu2 %v469_v18  ;;  %v523_v54 = vld [vmem:[#allocation5 + $0x658] sm:$0xff] }
 0x10d   : > { %1362 = vmatpush.msra.mxu3 %v571_v40  ;;  %1381 = vmatpush.msrb.mxu0 %v691_v41  ;;  %v870_v49 = vpop.f32.mrf.mxu1  ;;  %v913_v50 = vpop.f32.mrf.mxu3  ;;  %v643_v18 = vld [vmem:[#allocation5 + $0xa18] sm:$0xff] }
 0x10e   : > { %1283 = vmatmul.f32.gmra.mxu3 %v2363_v8  ;;  %1730 = vmatmul.msk.f32.vlgmr.msra.gmra.mxu0 %vm728_vm0, %v2367_v51  ;;  %v914_v53 = vadd.f32 %v913_v50, %v891_v44 }
 0x10f   : > { %1318 = vmatpush.msra.mxu1 %v367_v45  ;;  %1341 = vmatpush.msra.mxu2 %v463_v47 }
 0x110   : > { %1363 = vmatpush.msra.mxu3 %v565_v48  ;;  %1382 = vmatpush.msrb.mxu0 %v685_v56  ;;  %v936_v62 = vpop.f32.mrf.mxu0  ;;  %v727_v48 = vld [vmem:[#allocation5 + $0xcb8] sm:$0xff]  ;;  %v517_v56 = vld [vmem:[#allocation5 + $0x628] sm:$0xff] }
 0x111   : > { %1237 = vmatmul.f32.gmra.mxu1 %v2372_v63  ;;  %1342 = vmatpush.msra.mxu2 %v457_v52  ;;  %v937_v2 = vadd.f32 %v936_v62, %v914_v53 }
 0x112   : > { %1319 = vmatpush.msra.mxu1 %v361_v57  ;;  %1364 = vmatpush.msra.mxu3 %v559_v58  ;;  %v721_v57 = vld [vmem:[#allocation5 + $0xc88] sm:$0xff] }
 0x113   : > { %1383 = vmatpush.msrb.mxu0 %v679_v59  ;;  %1343 = vmatpush.msra.mxu2 %v451_v60  ;;  %v631_v60 = vld [vmem:[#allocation5 + $0x9b8] sm:$0xff] }
 0x114   : > { %1320 = vmatpush.msra.mxu1 %v355_v0  ;;  %1365 = vmatpush.msra.mxu3 %v553_v1  ;;  %v715_v0 = vld [vmem:[#allocation5 + $0xc58] sm:$0xff]  ;;  %v625_v1 = vld [vmem:[#allocation5 + $0x988] sm:$0xff] }
 0x115   : > { %1384 = vmatpush.msrb.mxu0 %v673_v4  ;;  %1344 = vmatpush.msra.mxu2 %v445_v5 }
 0x116   : > { %1321 = vmatpush.msra.mxu1 %v349_v6  ;;  %1366 = vmatpush.msra.mxu3 %v547_v7 }
 0x117   : > { %1385 = vmatpush.msrb.mxu0 %v667_v9  ;;  %1345 = vmatpush.msra.mxu2 %v439_v10  ;;  %v959_v27 = vpop.f32.mrf.mxu1  ;;  %v893_v17 = vpop.f32.mrf.mxu2 }
 0x118   : > { %1731 = vmatmul.msk.f32.gmra.mxu0 %vm728_vm0, %v2380_v33  ;;  %1322 = vmatpush.msra.mxu1 %v343_v11  ;;  %v960_v23 = vadd.f32 %v959_v27, %v937_v2  ;;  %v894_v24 = vadd.f32 %v893_v17, %v870_v49 }
 0x119   : > { %1367 = vmatpush.msra.mxu3 %v541_v13  ;;  %1386 = vmatpush.msrb.mxu0 %v661_v14 }
 0x11a   : > { %1323 = vmatpush.msra.mxu1 %v337_v15  ;;  %1346 = vmatpush.msra.mxu2 %v433_v16  ;;  %v1435_v32 = vrot.slane %v960_v23, 1  ;;  %v916_v61 = vpop.f32.mrf.mxu3 }
 0x11b   : > { %1368 = vmatpush.msra.mxu3 %v535_v46  ;;  %1387 = vmatpush.msrb.mxu0 %v655_v21  ;;  %v917_v37 = vadd.f32 %v916_v61, %v894_v24 }
 0x11c   : > { %1324 = vmatpush.msra.mxu1 %v331_v22  ;;  %1347 = vmatpush.msra.mxu2 %v427_v29  ;;  %v1437_v40 = vsel %vm1433_vm1, %v960_v23, %v1435_v32 }
 0x11d   : > { %1369 = vmatpush.msra.mxu3 %v529_v30  ;;  %1388 = vmatpush.msrb.mxu0 %v649_v31  ;;  %v939_v41 = vpop.f32.mrf.mxu0  ;;  %v1438_v42 = vperm.slane %v1437_v40, 0  ;;  %v1442_v44 = vperm.slane %v1437_v40, 2  ;;  %v1447_v45 = vperm.slane %v1437_v40, 4  ;;  %v1452_v47 = vperm.slane %v1437_v40, 6 }
 0x11e   : > { %1325 = vmatpush.msra.mxu1 %v325_v34  ;;  %1348 = vmatpush.msra.mxu2 %v421_v36  ;;  %v940_v49 = vadd.f32 %v939_v41, %v917_v37 }
 0x11f   : > { %1370 = vmatpush.msra.mxu3 %v523_v54  ;;  %1389 = vmatpush.msrb.mxu0 %v643_v18  ;;  %v2389_v50 = vadd.f32 %v1438_v42, %v1429_v39  ;;  %v2391_v52 = vadd.f32 %v1442_v44, %v1429_v39  ;;  %v2393_v53 = vadd.f32 %v1447_v45, %v1429_v39 }
 0x120   : > { %1326 = vmatmul.f32.vlgmr.msra.gmra.mxu1 %v2337_v28  ;;  %1349 = vmatmul.f32.vlgmr.msra.gmra.mxu2 %v2353_v35  ;;  %v962_v58 = vpop.f32.mrf.mxu1  ;;  %v2397_v59 = vadd.f32 %v1452_v47, %v1429_v39  ;;  %v1430_v28 = vadd.f32 %v2377_v20, %v2356_v38  ;;  %v619_v35 = vld [vmem:[#allocation5 + $0x958] sm:$0xff] }
 0x121   : > { %1414 = vmatpush.msrb.mxu1 %v727_v48  ;;  %1371 = vmatpush.msra.mxu3 %v517_v56  ;;  %v963_v62 = vadd.f32 %v962_v58, %v940_v49 }
 0x122   : > { %1390 = vmatpush.msrb.mxu0 %v637_v55  ;;  %1372 = vmatmul.f32.vlgmr.msra.gmra.mxu3 %v2341_v19  ;;  %v613_v19 = vld [vmem:[#allocation5 + $0x928] sm:$0xff] }
 0x123   : > { %1415 = vmatpush.msrb.mxu1 %v721_v57  ;;  %v1461_v2 = vrot.slane %v963_v62, 1 }
 0x124   : > { %1391 = vmatpush.msrb.mxu0 %v631_v60 }
 0x125   : > { %1416 = vmatpush.msrb.mxu1 %v715_v0  ;;  %v1463_v4 = vsel %vm1433_vm1, %v963_v62, %v1461_v2 }
 0x126   : > { %1392 = vmatpush.msrb.mxu0 %v625_v1  ;;  %v1464_v5 = vperm.slane %v1463_v4, 0  ;;  %v1468_v6 = vperm.slane %v1463_v4, 2  ;;  %v1473_v7 = vperm.slane %v1463_v4, 4  ;;  %v1478_v9 = vperm.slane %v1463_v4, 6 }
 0x127   : > { %1417 = vmatpush.msrb.mxu1 %v709_v3 }
 0x128   : > { %1393 = vmatpush.msrb.mxu0 %v619_v35  ;;  %1329 = vmatmul.f32.gmra.mxu1 %v2345_v25  ;;  %v1465_v10 = vadd.f32 %v1464_v5, %v1430_v28  ;;  %v1469_v11 = vadd.f32 %v1468_v6, %v1430_v28  ;;  %v2405_v13 = vadd.f32 %v1473_v7, %v1430_v28 }
 0x129   : > { %1352 = vmatmul.f32.gmra.mxu2 %v2372_v63  ;;  %v2408_v38 = vadd.f32 %v1478_v9, %v1430_v28 }
 0x12a   : > { %1394 = vmatpush.msrb.mxu0 %v613_v19  ;;  %1375 = vmatmul.f32.gmra.mxu3 %v2359_v43 }
 0x12b   : > { %1395 = vmatmul.f32.vlgmr.msrb.gmra.mxu0 %v2349_v26 }
 0x12d   : > { %v982_v25 = vpop.f32.mrf.mxu2 }
 0x130   : > { %1732 = vmatmul.msk.f32.vlgmr.msrb.gmra.mxu1 %vm728_vm0, %v2367_v51 }
 0x133   : > { %1398 = vmatmul.f32.gmra.mxu0 %v2363_v8 }
 0x137   : > { %v985_v14 = vpop.f32.mrf.mxu2 }
 0x138   : > { %1733 = vmatmul.msk.f32.gmra.mxu1 %vm728_vm0, %v2380_v33 }
 0x139   : > { %v1005_v12 = vpop.f32.mrf.mxu3 }
 0x13a   : > { %v1006_v20 = vadd.f32 %v1005_v12, %v982_v25 }
 0x13d   : > { %v1028_v63 = vpop.f32.mrf.mxu0 }
 0x13e   : > { %v1029_v21 = vadd.f32 %v1028_v63, %v1006_v20 }
 0x13f   : > { %v1051_v16 = vpop.f32.mrf.mxu1 }
 0x140   : > { %v1074_v27 = vpop.f32.mrf.mxu2  ;;  %v1052_v51 = vadd.f32 %v1051_v16, %v1029_v21  ;;  %v1517_v21 = vld [vmem:[#allocation8 + $0xf8] sm:$0xff] }
 0x141   : > { %1547 = vmatpush.msrb.mxu3 %v1517_v21 }
 0x142   : > { %v1008_v15 = vpop.f32.mrf.mxu3  ;;  %v1075_v30 = vadd.f32 %v1074_v27, %v1052_v51  ;;  %v1512_v51 = vld [vmem:[#allocation8 + $0xd0] sm:$0xff] }
 0x143   : > { %v1009_v22 = vadd.f32 %v1008_v15, %v985_v14 }
 0x144   : > { %v1440_v36 = vadd.f32 %v2389_v50, %v1075_v30  ;;  %v1509_v30 = vld [vmem:[#allocation8 + $0xb8] sm:$0xff] }
 0x146   : > { %v1031_v43 = vpop.f32.mrf.mxu0  ;;  %v1441_v41 = vmax.f32 %v1440_v36, 0.0 }
 0x147   : > { %v1032_v32 = vadd.f32 %v1031_v43, %v1009_v22  ;;  %v1511_v22 = vld [vmem:[#allocation8 + $0xc8] sm:$0xff] }
 0x149   : > { %v1054_v46 = vpop.f32.mrf.mxu1 }
 0x14a   : > { %v1077_v26 = vpop.f32.mrf.mxu2  ;;  %v1055_v39 = vadd.f32 %v1054_v46, %v1032_v32 }
 0x14c   : > { %v1078_v47 = vadd.f32 %v1077_v26, %v1055_v39  ;;  %v1516_v26 = vld [vmem:[#allocation8 + $0xf0] sm:$0xff] }
 0x14d   : > { %1524 = vmatpush.msrb.mxu2 %v1516_v26  ;;  %v1504_v39 = vld [vmem:[#allocation8 + $0x90] sm:$0xff] }
 0x14e   : > { %v1466_v57 = vadd.f32 %v1465_v10, %v1078_v47 }
 0x150   : > { %v1467_v62 = vmax.f32 %v1466_v57, 0.0  ;;  %v1499_v57 = vld [vmem:[#allocation8 + $0x68] sm:$0xff] }
 0x152   : > { %v1097_v17 = vpop.f32.mrf.mxu3 }
 0x15a   : > { %v1100_v23 = vpop.f32.mrf.mxu3 }
 0x15f   : > { %v1120_v24 = vpop.f32.mrf.mxu0 }
 0x160   : > { %v1121_v8 = vadd.f32 %v1120_v24, %v1097_v17  ;;  %v1513_v24 = vld [vmem:[#allocation8 + $0xd8] sm:$0xff] }
 0x162   : > { %v1143_v29 = vpop.f32.mrf.mxu1  ;;  %v1166_v33 = vpop.f32.mrf.mxu2 }
 0x163   : > { %v1144_v31 = vadd.f32 %v1143_v29, %v1121_v8  ;;  %v1510_v8 = vld [vmem:[#allocation8 + $0xc0] sm:$0xff] }
 0x165   : > { %v1167_v61 = vadd.f32 %v1166_v33, %v1144_v31  ;;  %v1189_v34 = vpop.f32.mrf.mxu3  ;;  %v1508_v33 = vld [vmem:[#allocation8 + $0xb0] sm:$0xff] }
 0x167   : > { %v1190_v37 = vadd.f32 %v1189_v34, %v1167_v61  ;;  %v1506_v61 = vld [vmem:[#allocation8 + $0xa0] sm:$0xff]  ;;  %v1507_v34 = vld [vmem:[#allocation8 + $0xa8] sm:$0xff] }
 0x169   : > { %v1444_v54 = vadd.f32 %v2391_v52, %v1190_v37  ;;  %v1123_v18 = vpop.f32.mrf.mxu0 }
 0x16a   : > { %v1124_v40 = vadd.f32 %v1123_v18, %v1100_v23  ;;  %v1515_v23 = vld [vmem:[#allocation8 + $0xe8] sm:$0xff]  ;;  %v1502_v18 = vld [vmem:[#allocation8 + $0x80] sm:$0xff] }
 0x16b   : > { %v1445_v42 = vmax.f32 %v1444_v54, 0.0  ;;  %1548 = vmatpush.msrb.mxu3 %v1515_v23  ;;  %v1505_v54 = vld [vmem:[#allocation8 + $0x98] sm:$0xff] }
 0x16c   : > { %v1146_v44 = vpop.f32.mrf.mxu1  ;;  %v1169_v45 = vpop.f32.mrf.mxu2 }
 0x16d   : > { %v1446_v48 = vmax.f32 %v1441_v41, %v1445_v42  ;;  %v1147_v56 = vadd.f32 %v1146_v44, %v1124_v40  ;;  %1549 = vmatpush.msrb.mxu3 %v1513_v24  ;;  %v1503_v40 = vld [vmem:[#allocation8 + $0x88] sm:$0xff]  ;;  %v1500_v44 = vld [vmem:[#allocation8 + $0x70] sm:$0xff] }
 0x16f   : > { %v1170_v49 = vadd.f32 %v1169_v45, %v1147_v56  ;;  %v1192_v55 = vpop.f32.mrf.mxu3  ;;  %1550 = vmatpush.msrb.mxu3 %v1511_v22  ;;  %v1501_v45 = vld [vmem:[#allocation8 + $0x78] sm:$0xff] }
 0x171   : > { %v1193_v58 = vadd.f32 %v1192_v55, %v1170_v49  ;;  %1551 = vmatpush.msrb.mxu3 %v1509_v30  ;;  %v1498_v55 = vld [vmem:[#allocation8 + $0x60] sm:$0xff] }
 0x173   : > { %v1470_v60 = vadd.f32 %v1469_v11, %v1193_v58  ;;  %1552 = vmatpush.msrb.mxu3 %v1507_v34 }
 0x175   : > { %v1471_v50 = vmax.f32 %v1470_v60, 0.0  ;;  %1553 = vmatpush.msrb.mxu3 %v1505_v54 }
 0x177   : > { %v1472_v0 = vmax.f32 %v1467_v62, %v1471_v50  ;;  %1554 = vmatpush.msrb.mxu3 %v1503_v40  ;;  %v1496_v62 = vld [vmem:[#allocation8 + $0x50] sm:$0xff]  ;;  %v1497_v50 = vld [vmem:[#allocation8 + $0x58] sm:$0xff] }
 0x178   : > { %v1212_v1 = vpop.f32.mrf.mxu0 }
 0x179   : > { %1555 = vmatpush.msrb.mxu3 %v1501_v45 }
 0x17b   : > { %1556 = vmatpush.msrb.mxu3 %v1499_v57 }
 0x17d   : > { %1557 = vmatpush.msrb.mxu3 %v1497_v50 }
 0x181   : > { %v1215_v2 = vpop.f32.mrf.mxu0 }
 0x184   : > { %v1235_v52 = vpop.f32.mrf.mxu1  ;;  %v1258_v3 = vpop.f32.mrf.mxu2 }
 0x185   : > { %v1236_v28 = vadd.f32 %v1235_v52, %v1212_v1  ;;  %v1495_v52 = vld [vmem:[#allocation8 + $0x48] sm:$0xff] }
 0x186   : > { %1558 = vmatpush.msrb.mxu3 %v1495_v52 }
 0x187   : > { %v1259_v35 = vadd.f32 %v1258_v3, %v1236_v28  ;;  %v1281_v4 = vpop.f32.mrf.mxu3 }
 0x189   : > { %v1282_v5 = vadd.f32 %v1281_v4, %v1259_v35  ;;  %v1492_v35 = vld [vmem:[#allocation8 + $0x30] sm:$0xff]  ;;  %v1493_v4 = vld [vmem:[#allocation8 + $0x38] sm:$0xff] }
 0x18a   : > { %1559 = vmatpush.msrb.mxu3 %v1493_v4 }
 0x18b   : > { %v1304_v6 = vpop.f32.mrf.mxu0 }
 0x18c   : > { %v1305_v7 = vadd.f32 %v1304_v6, %v1282_v5 }
 0x18e   : > { %v1449_v9 = vadd.f32 %v2393_v53, %v1305_v7  ;;  %v1238_v19 = vpop.f32.mrf.mxu1  ;;  %v1261_v25 = vpop.f32.mrf.mxu2  ;;  %v1514_v53 = vld [vmem:[#allocation8 + $0xe0] sm:$0xff]  ;;  %v1491_v7 = vld [vmem:[#allocation8 + $0x28] sm:$0xff] }
 0x18f   : > { %v1239_v10 = vadd.f32 %v1238_v19, %v1215_v2  ;;  %1525 = vmatpush.msrb.mxu2 %v1514_v53  ;;  %v1494_v2 = vld [vmem:[#allocation8 + $0x40] sm:$0xff]  ;;  %v1488_v19 = vld [vmem:[#allocation8 + $0x10] sm:$0xff]  ;;  %1560 = vmatpush.msrb.mxu3 %v1491_v7 }
 0x190   : > { %v1450_v12 = vmax.f32 %v1449_v9, 0.0 }
 0x191   : > { %v1262_v11 = vadd.f32 %v1261_v25, %v1239_v10  ;;  %v1284_v14 = vpop.f32.mrf.mxu3  ;;  %1526 = vmatpush.msrb.mxu2 %v1512_v51  ;;  %v1489_v25 = vld [vmem:[#allocation8 + $0x18] sm:$0xff] }
 0x192   : > { %v2420_v15 = vmax.f32 %v1446_v48, %v1450_v12  ;;  %1561 = vmatpush.msrb.mxu3 %v1489_v25 }
 0x193   : > { %v1285_v63 = vadd.f32 %v1284_v14, %v1262_v11  ;;  %1527 = vmatpush.msrb.mxu2 %v1510_v8  ;;  %v1486_v11 = vld [vmem:[#allocation8] sm:$0xff]  ;;  %v1487_v14 = vld [vmem:[#allocation8 + $0x8] sm:$0xff] }
 0x194   : > { %1562 = vmatpush.msrb.mxu3 %v1487_v14 }
 0x195   : > { %v1307_v16 = vpop.f32.mrf.mxu0  ;;  %1528 = vmatpush.msrb.mxu2 %v1508_v33 }
 0x196   : > { %v1308_v27 = vadd.f32 %v1307_v16, %v1285_v63 }
 0x197   : > { %1529 = vmatpush.msrb.mxu2 %v1506_v61 }
 0x198   : > { %v1475_v17 = vadd.f32 %v2405_v13, %v1308_v27  ;;  %v1518_v27 = vld [vmem:[#allocation10] sm:$0x3] }
 0x199   : > { %1530 = vmatpush.msrb.mxu2 %v1504_v39 }
 0x19a   : > { %v1476_v20 = vmax.f32 %v1475_v17, 0.0  ;;  %v1520_v17 = vperm.slane %v1518_v27, 0 }
 0x19b   : > { %1531 = vmatpush.msrb.mxu2 %v1502_v18 }
 0x19c   : > { %v2423_v43 = vmax.f32 %v1472_v0, %v1476_v20  ;;  %v1521_v20 = vperm.slane %v1518_v27, 1 }
 0x19d   : > { %v1327_v46 = vpop.f32.mrf.mxu1  ;;  %1532 = vmatpush.msrb.mxu2 %v1500_v44 }
 0x19f   : > { %1533 = vmatpush.msrb.mxu2 %v1498_v55 }
 0x1a1   : > { %1534 = vmatpush.msrb.mxu2 %v1496_v62 }
 0x1a3   : > { %v1350_v29 = vpop.f32.mrf.mxu2  ;;  %1535 = vmatpush.msrb.mxu2 %v1494_v2 }
 0x1a4   : > { %v1351_v13 = vadd.f32 %v1350_v29, %v1327_v46 }
 0x1a5   : > { %v1330_v31 = vpop.f32.mrf.mxu1  ;;  %v1373_v32 = vpop.f32.mrf.mxu3  ;;  %1536 = vmatpush.msrb.mxu2 %v1492_v35 }
 0x1a6   : > { %v1374_v36 = vadd.f32 %v1373_v32, %v1351_v13 }
 0x1a8   : > { %v1396_v37 = vpop.f32.mrf.mxu0 }
 0x1a9   : > { %v1397_v41 = vadd.f32 %v1396_v37, %v1374_v36 }
 0x1ac   : > { %v1353_v42 = vpop.f32.mrf.mxu2 }
 0x1ad   : > { %v1354_v47 = vadd.f32 %v1353_v42, %v1330_v31  ;;  %v1376_v48 = vpop.f32.mrf.mxu3  ;;  %v1419_v56 = vpop.f32.mrf.mxu1 }
 0x1ae   : > { %v1420_v49 = vadd.f32 %v1419_v56, %v1397_v41 }
 0x1af   : > { %v1377_v58 = vadd.f32 %v1376_v48, %v1354_v47 }
 0x1b0   : > { %v1454_v60 = vadd.f32 %v2397_v59, %v1420_v49  ;;  %v1399_v0 = vpop.f32.mrf.mxu0  ;;  %v1490_v59 = vld [vmem:[#allocation8 + $0x20] sm:$0xff] }
 0x1b1   : > { %v1400_v3 = vadd.f32 %v1399_v0, %v1377_v58  ;;  %1537 = vmatpush.msrb.mxu2 %v1490_v59 }
 0x1b2   : > { %v1455_v1 = vmax.f32 %v1454_v60, 0.0 }
 0x1b3   : > { %1538 = vmatpush.msrb.mxu2 %v1488_v19 }
 0x1b4   : > { %v1456_v28 = vmax.f32 %v2420_v15, %v1455_v1 }
 0x1b5   : > { %v1422_v5 = vpop.f32.mrf.mxu1  ;;  %1539 = vmatpush.msrb.mxu2 %v1486_v11 }
 0x1b6   : > { %v1423_v6 = vadd.f32 %v1422_v5, %v1400_v3  ;;  %1457 = vrot.lane.b32.xlu0 %v1456_v28, %s2088_s24 }
 0x1b8   : > { %v1480_v9 = vadd.f32 %v2408_v38, %v1423_v6 }
 0x1ba   : > { %v1481_v10 = vmax.f32 %v1480_v9, 0.0 }
 0x1bc   : > { %v1482_v12 = vmax.f32 %v2423_v43, %v1481_v10 }
 0x1be   : > { %1483 = vrot.lane.b32.xlu0 %v1482_v12, %s2088_s24 }
 0x228   : > { %v1458_v15 = vpop.permute.xlu0 %1457 }
 0x229   : > { %v1459_v63 = vmax.f32 %v1456_v28, %v1458_v15 }
 0x22b   : > { %1540 = vmatmul.f32.vlgmr.msrb.gmra.mxu2 %v1459_v63  ;;  %1563 = vmatmul.f32.vlgmr.msrb.gmra.mxu3 %v1459_v63 }
 0x230   : > { %v1484_v38 = vpop.permute.xlu0 %1483 }
 0x231   : > { %v1485_v16 = vmax.f32 %v1482_v12, %v1484_v38 }
 0x233   : > { %1543 = vmatmul.f32.gmra.mxu2 %v1485_v16  ;;  %1566 = vmatmul.f32.gmra.mxu3 %v1485_v16 }
 0x2ae   : > { %v1541_v43 = vpop.f32.mrf.mxu2  ;;  %v1564_v46 = vpop.f32.mrf.mxu3 }
 0x2af   : > { %v1542_v26 = vadd.f32 %v1541_v43, %v1520_v17  ;;  %v1565_v21 = vadd.f32 %v1564_v46, %v1521_v20 }
 0x2b1   : > { %v1570_v53 = vmax.f32 %v1542_v26, 0.0  ;;  %v1571_v23 = vmax.f32 %v1565_v21, 0.0 }
 0x2b3   : > { %1574 = vst [vmem:[%s307_s6] sm:$0xff] %v1570_v53 }
 0x2b4   : > { %1575 = vst [vmem:[%s307_s6 + $0x8] sm:$0xff] %v1571_v23 }
 0x2b6   : > { %v1544_v51 = vpop.f32.mrf.mxu2  ;;  %v1567_v24 = vpop.f32.mrf.mxu3 }
 0x2b7   : > { %v1545_v8 = vadd.f32 %v1544_v51, %v1520_v17  ;;  %v1568_v22 = vadd.f32 %v1567_v24, %v1521_v20 }
 0x2b9   : > { %v1572_v29 = vmax.f32 %v1545_v8, 0.0  ;;  %v1573_v13 = vmax.f32 %v1568_v22, 0.0 }
 0x2bb   : > { %1576 = vst [vmem:[%s307_s6 + $0x10] sm:$0xff] %v1572_v29 }
 0x2bc   : > { %1577 = vst [vmem:[%s307_s6 + $0x18] sm:$0xff] %v1573_v13 }
 0x2bd   : > { %2029 = shalt.err (!%p2026_p10)
}
 0x2be   : > { %s2089_s1 = smov 256   ;;  %s2090_s24 = smov 16  }
 0x2bf   : > { %1763 = dma.vmem_to_hbm [thread:$0]  (%p2205_p3), %s1593_s13, 512, %s1595_s26, %s1579_s22, %s2089_s1, %s2089_s1, %s2090_s24  }
 0x2c0 PF: > { %s1609_s29 = sand.u32 1, %s2064_s18   ;;  %p2477_p12 = scmp.ge.s32.totalorder %s2076_s21, 2 }
 0x2c1   : > { %s1610_s23 = scalar_lea.sflag [#allocation4], %s1609_s29 }
 0x2c2   : > { %p1783_p13 = pnand %p2477_p12, %p2156_p6 }
 0x2c4   : > { %p1784_p0 = pneg %p1783_p13 }
 0x2c6   : > { %2059 = dma.done.wait (%p1784_p0), %s1610_s23, 512  }
 0x2c7   : > { %2061 = vsyncadd (%p1784_p0), %s1610_s23, 4294966784  ;;  %p20_p5 = scmp.ge.s32.totalorder %s2195_s11, 4   ;;  %s2478_s18 = smov %s2068_s19 }
 0x2c8   : > { %s2479_s19 = smov %s2072_s20  ;;  %s2480_s20 = smov %s2211_s15 }
 0x2c9   : > { %s2481_s21 = smov %s2195_s11  ;;  %22 = sbr.rel (!%p20_p5) target bundleno = 9 (0x9), region = 101 }
 0x2ce   :  { %1616 = vsyncpa [#allocation3], 1 }
 0x2cf   :  { %1618 = vsyncpa [#allocation3 + $0x1], 1 }
 0x2d0   :  { %1619 = vsyncpa [#allocation6], 1 }
 0x2d1   :  { %1620 = vsyncpa [#allocation9], 1 }
 0x2d2   :  { %1621 = vsyncpa [#allocation4], 1 }
 0x2d3   :  { %1623 = vsyncpa [#allocation4 + $0x1], 1 }

</bundles_post_ra>
